<compile_context>
chip_gen: v6e
topology: v6e:2x2x1
jax: 0.10.0
libtpu: 0.0.40
codegen_flags: <defaults>
</compile_context>

<pallas_src>
from functools import partial

import numpy as np
import jax
import jax.numpy as jnp
from jax.experimental import pallas as pl
from jax.experimental.pallas import tpu as pltpu


# ----------------------------------------------------------------------------
# Generation-aware constants
# ----------------------------------------------------------------------------
def _tpu_vmem_bytes():
    try:
        return int(pltpu.get_tpu_info().vmem_capacity_bytes)
    except Exception:
        return 64 * 1024 * 1024  # conservative (v7x-sized) fallback


_VMEM_CAP = _tpu_vmem_bytes()
_BIG_VMEM = _VMEM_CAP >= 100 * 1024 * 1024        # v5e / v6e (128 MiB) vs v7x (64 MiB)

VMEM_LIMIT = (64 if _BIG_VMEM else 40) * 1024 * 1024
TM_DEFAULT = 512 if _BIG_VMEM else 256            # row tile (generic matmuls)
TN_DEFAULT = 1024 if _BIG_VMEM else 512           # out-feature tile
TK_DEFAULT = 1024                                 # contraction tile
TM_CE = 2048 if _BIG_VMEM else 1024               # big row tile => LM-head weight
TV_CE = 1024 if _BIG_VMEM else 512                #   streamed ~once per forward
MLP_FUSE_BUDGET = (40 if _BIG_VMEM else 18) * 1024 * 1024


def _round_up(v, m):
    return (v + m - 1) // m * m


def _pad_to(x, target_shape):
    pads = [(0, t - s) for s, t in zip(x.shape, target_shape)]
    if all(p == (0, 0) for p in pads):
        return x
    return jnp.pad(x, pads)


# ----------------------------------------------------------------------------
# Generic tiled linear: (M,K) @ (K,N) + b [+ residual] [+ gelu]
# bf16 inputs, f32 VMEM accumulation, bias folded into k==0 init.
# ----------------------------------------------------------------------------
def _matmul_kernel(*refs, activation, has_residual):
    if has_residual:
        x_ref, w_ref, b_ref, r_ref, o_ref, acc_ref = refs
    else:
        x_ref, w_ref, b_ref, o_ref, acc_ref = refs
        r_ref = None
    k = pl.program_id(2)

    @pl.when(k == 0)
    def _():
        # bias folded into accumulator init (added exactly once per output tile)
        acc_ref[...] = jnp.broadcast_to(b_ref[...], acc_ref.shape)

    acc_ref[...] += jnp.dot(x_ref[...], w_ref[...],
                            preferred_element_type=jnp.float32)

    @pl.when(k == pl.num_programs(2) - 1)
    def _():
        y = acc_ref[...]
        if activation == "gelu":
            y = jax.nn.gelu(y)
        if has_residual:
            y = y + r_ref[...].astype(jnp.float32)
        o_ref[...] = y.astype(o_ref.dtype)


def pallas_linear(x, w_pad, b_pad, out_features=None, activation=None,
                  residual=None, out_dtype=jnp.bfloat16):
    """x:(M,K); w_pad:(Kw,Nw) pre-padded bf16; b_pad:(1,Nw) f32. Returns (M,N)."""
    M, K = x.shape
    Kw, Nw = w_pad.shape
    N = out_features if out_features is not None else Nw

    tm = min(TM_DEFAULT, _round_up(max(M, 1), 16))     # 16: bf16-native sublanes
    tk = min(TK_DEFAULT, _round_up(Kw, 128))
    tn = min(TN_DEFAULT, _round_up(N, 128))
    Mp = _round_up(M, tm)
    Kp = _round_up(Kw, tk)
    Np = _round_up(max(Nw, tn), tn)

    xp = _pad_to(x.astype(jnp.bfloat16), (Mp, Kp))
    wp = _pad_to(w_pad.astype(jnp.bfloat16), (Kp, Np))
    bp = _pad_to(b_pad.astype(jnp.float32), (1, Np))

    operands = [xp, wp, bp]
    in_specs = [
        pl.BlockSpec((tm, tk), lambda i, j, k: (i, k)),
        pl.BlockSpec((tk, tn), lambda i, j, k: (k, j)),
        pl.BlockSpec((1, tn), lambda i, j, k: (0, j)),
    ]
    if residual is not None:
        rp = _pad_to(residual.astype(out_dtype), (Mp, Np))
        operands.append(rp)
        in_specs.append(pl.BlockSpec((tm, tn), lambda i, j, k: (i, j)))

    out = pl.pallas_call(
        partial(_matmul_kernel, activation=activation,
                has_residual=residual is not None),
        out_shape=jax.ShapeDtypeStruct((Mp, Np), out_dtype),
        grid=(Mp // tm, Np // tn, Kp // tk),
        in_specs=in_specs,
        out_specs=pl.BlockSpec((tm, tn), lambda i, j, k: (i, j)),
        scratch_shapes=[pltpu.VMEM((tm, tn), jnp.float32)],
        compiler_params=pltpu.CompilerParams(
            dimension_semantics=("parallel", "parallel", "arbitrary"),
            vmem_limit_bytes=VMEM_LIMIT),
    )(*operands)
    return out[:M, :N]


# ----------------------------------------------------------------------------
# Fused residual MLP block: y = gelu(x@w1 + b1) @ w2 + b2 + x  (bf16 output)
# Fully-fused path keeps both weights resident; the intermediate never leaves
# VMEM.  Falls back to two tiled matmuls (bf16 intermediate, residual fused
# into the second matmul epilogue) when the weights don't fit the VMEM budget.
# ----------------------------------------------------------------------------
def _mlp_block_kernel(x_ref, w1_ref, b1_ref, w2_ref, b2_ref, o_ref):
    x = x_ref[...]
    h = jnp.dot(x, w1_ref[...], preferred_element_type=jnp.float32) + b1_ref[...]
    h = jax.nn.gelu(h)
    y = jnp.dot(h.astype(jnp.bfloat16), w2_ref[...],
                preferred_element_type=jnp.float32) + b2_ref[...]
    o_ref[...] = (y + x.astype(jnp.float32)).astype(o_ref.dtype)


def pallas_mlp_block(x, w1_pad, b1_pad, w2_pad, b2_pad, out_features):
    M, _ = x.shape
    D = out_features
    Dp = w1_pad.shape[0]                              # pre-padded, 128-multiple
    tm = min(TM_DEFAULT, _round_up(max(M, 1), 16))

    # VMEM estimate for the fused path; count the pipeline's buffering of the
    # grid-invariant weight blocks conservatively (x2).
    weight_bytes = 2 * (Dp * Dp * 2) * 2
    io_bytes = 2 * (tm * Dp * 2) * 2
    if weight_bytes + io_bytes > MLP_FUSE_BUDGET:
        # Fallback for large D (real SEED-X): bf16 intermediate, fused residual.
        h = pallas_linear(x, w1_pad, b1_pad, out_features=D,
                          activation="gelu", out_dtype=jnp.bfloat16)
        return pallas_linear(h, w2_pad, b2_pad, out_features=D,
                             residual=x, out_dtype=jnp.bfloat16)

    Mp = _round_up(M, tm)
    xp = _pad_to(x.astype(jnp.bfloat16), (Mp, Dp))

    out = pl.pallas_call(
        _mlp_block_kernel,
        out_shape=jax.ShapeDtypeStruct((Mp, Dp), jnp.bfloat16),
        grid=(Mp // tm,),
        in_specs=[
            pl.BlockSpec((tm, Dp), lambda i: (i, 0)),
            pl.BlockSpec((Dp, Dp), lambda i: (0, 0)),
            pl.BlockSpec((1, Dp), lambda i: (0, 0)),
            pl.BlockSpec((Dp, Dp), lambda i: (0, 0)),
            pl.BlockSpec((1, Dp), lambda i: (0, 0)),
        ],
        out_specs=pl.BlockSpec((tm, Dp), lambda i: (i, 0)),
        compiler_params=pltpu.CompilerParams(
            dimension_semantics=("parallel",),
            vmem_limit_bytes=VMEM_LIMIT),
    )(xp, w1_pad, b1_pad, w2_pad, b2_pad)
    return out[:M, :D]


# ----------------------------------------------------------------------------
# Fused LM head + shifted cross-entropy.  Logits are computed tile-by-tile in
# VMEM with an online log-sum-exp and never written to HBM.  Row tile is made
# as large as the VMEM budget allows so the (huge) LM-head weight is streamed
# from HBM ~once instead of once per 256 rows.
# ----------------------------------------------------------------------------
def _lmhead_ce_kernel(h_ref, w_ref, b_ref, lab_ref, loss_ref, m_sc, l_sc, t_sc):
    j = pl.program_id(1)
    tv = w_ref.shape[1]

    @pl.when(j == 0)
    def _():
        m_sc[...] = jnp.full_like(m_sc, -1e30)
        l_sc[...] = jnp.zeros_like(l_sc)
        t_sc[...] = jnp.zeros_like(t_sc)

    logits = jnp.dot(h_ref[...], w_ref[...],
                     preferred_element_type=jnp.float32) + b_ref[...]
    labels = lab_ref[...]                                      # (tm, 1) int32
    # (1, tv) column-id row broadcast against (tm, 1) labels: avoids a full
    # (tm, tv) iota + add every grid step.
    col = jax.lax.broadcasted_iota(jnp.int32, (1, tv), 1) + j * tv

    m_prev = m_sc[...]
    m_new = jnp.maximum(m_prev, jnp.max(logits, axis=-1, keepdims=True))
    l_sc[...] = (l_sc[...] * jnp.exp(m_prev - m_new)
                 + jnp.sum(jnp.exp(logits - m_new), axis=-1, keepdims=True))
    m_sc[...] = m_new
    # target logit without materializing a one-hot (label lives in one tile)
    t_sc[...] += jnp.sum(jnp.where(col == labels, logits, 0.0),
                         axis=-1, keepdims=True)

    @pl.when(j == pl.num_programs(1) - 1)
    def _():
        valid = (labels != -100).astype(jnp.float32)
        lse = m_sc[...] + jnp.log(l_sc[...])
        loss_ref[...] = (lse - t_sc[...]) * valid


def pallas_lm_head_cross_entropy(h, w_pad, b_pad, labels):
    """h:(N,D) bf16; w_pad:(Kw,Vw) pre-padded bf16; b_pad:(1,Vw) f32 with -1e30
    in padded vocab columns; labels:(N,) int32 (ignore=-100).
    Returns per-row NLL (N,) f32 (0 at ignored rows)."""
    N, _ = h.shape
    Kw, Vw = w_pad.shape
    tm = min(TM_CE, _round_up(max(N, 1), 16))
    tv = min(TV_CE, _round_up(Vw, 128))
    Np = _round_up(N, tm)
    Vp = _round_up(Vw, tv)
    Kp = _round_up(Kw, 128)

    hp = _pad_to(h.astype(jnp.bfloat16), (Np, Kp))
    wp = _pad_to(w_pad, (Kp, Vp))
    bp = jnp.pad(b_pad, ((0, 0), (0, Vp - Vw)), constant_values=-1e30)
    labp = jnp.pad(labels.reshape(N, 1).astype(jnp.int32),
                   ((0, Np - N), (0, 0)), constant_values=-100)

    per_row = pl.pallas_call(
        _lmhead_ce_kernel,
        out_shape=jax.ShapeDtypeStruct((Np, 1), jnp.float32),
        grid=(Np // tm, Vp // tv),
        in_specs=[
            pl.BlockSpec((tm, Kp), lambda i, j: (i, 0)),
            pl.BlockSpec((Kp, tv), lambda i, j: (0, j)),
            pl.BlockSpec((1, tv), lambda i, j: (0, j)),
            pl.BlockSpec((tm, 1), lambda i, j: (i, 0)),
        ],
        out_specs=pl.BlockSpec((tm, 1), lambda i, j: (i, 0)),
        scratch_shapes=[pltpu.VMEM((tm, 1), jnp.float32),
                        pltpu.VMEM((tm, 1), jnp.float32),
                        pltpu.VMEM((tm, 1), jnp.float32)],
        compiler_params=pltpu.CompilerParams(
            dimension_semantics=("parallel", "arbitrary"),
            vmem_limit_bytes=VMEM_LIMIT),
    )(hp, wp, bp, labp)
    return per_row[:N, 0]


# ----------------------------------------------------------------------------
# Fused output-resampler linear + MSE reduction.  The squared error is reduced
# per-row-tile while the output tile is resident in VMEM; the row axis is
# "parallel" (megacore-friendly on v7x) and the partial sums are reduced
# outside.  No per-tile iota/mask filler: padded columns contribute exactly 0
# (zero weight/bias/target) and padded rows are sliced away.
# ----------------------------------------------------------------------------
def _out_resampler_mse_kernel(x_ref, w_ref, b_ref, t_ref, o_ref, sse_ref):
    j = pl.program_id(1)

    @pl.when(j == 0)
    def _():
        sse_ref[...] = jnp.zeros_like(sse_ref)

    y = jnp.dot(x_ref[...], w_ref[...],
                preferred_element_type=jnp.float32) + b_ref[...]
    o_ref[...] = y.astype(o_ref.dtype)

    d = y - t_ref[...]
    sse_ref[...] += jnp.sum(d * d, axis=-1, keepdims=True)


def pallas_out_resampler_mse(x, w_pad, b_pad, target, out_features):
    """recon = x @ w + b, mse = mean((recon - target)^2) over logical elems."""
    R, _ = x.shape
    Kw, Ew = w_pad.shape
    E = out_features
    tm = min(TM_DEFAULT, _round_up(max(R, 1), 16))
    tn = min(TN_DEFAULT, _round_up(Ew, 128))
    Rp = _round_up(R, tm)
    Ep = _round_up(Ew, tn)
    Kp = _round_up(Kw, 128)

    xp = _pad_to(x.astype(jnp.bfloat16), (Rp, Kp))
    wp = _pad_to(w_pad, (Kp, Ep))
    bp = _pad_to(b_pad, (1, Ep))
    tp = _pad_to(target.astype(jnp.float32), (Rp, Ep))

    recon, sse = pl.pallas_call(
        _out_resampler_mse_kernel,
        out_shape=(jax.ShapeDtypeStruct((Rp, Ep), jnp.float32),
                   jax.ShapeDtypeStruct((Rp, 1), jnp.float32)),
        grid=(Rp // tm, Ep // tn),
        in_specs=[
            pl.BlockSpec((tm, Kp), lambda i, j: (i, 0)),
            pl.BlockSpec((Kp, tn), lambda i, j: (0, j)),
            pl.BlockSpec((1, tn), lambda i, j: (0, j)),
            pl.BlockSpec((tm, tn), lambda i, j: (i, j)),
        ],
        out_specs=(pl.BlockSpec((tm, tn), lambda i, j: (i, j)),
                   pl.BlockSpec((tm, 1), lambda i, j: (i, 0))),
        compiler_params=pltpu.CompilerParams(
            dimension_semantics=("parallel", "arbitrary"),
            vmem_limit_bytes=VMEM_LIMIT),
    )(xp, wp, bp, tp)

    mse = jnp.sum(sse[:R, 0]) / float(R * E)
    return recon[:R, :E], mse


# ----------------------------------------------------------------------------
# Parameter construction (deterministic, synthetic).  Weights are stored
# pre-cast to bf16 and pre-padded to 128-multiples ONCE here, so no per-step
# weight cast/pad traffic is incurred in the forward pass.
# ----------------------------------------------------------------------------
def init_params(key, vocab, dim, vit_dim):
    ks = jax.random.split(key, 8)
    s = 0.02
    dim_p = _round_up(dim, 128)
    vit_p = _round_up(vit_dim, 128)
    voc_p = _round_up(vocab, 128)

    def wpad(k, shape, pshape):
        w = s * jax.random.normal(k, shape, jnp.float32)
        return _pad_to(w.astype(jnp.bfloat16), pshape)

    return {
        # embedding table kept at logical shape (gather), bf16
        "tok_embed": (s * jax.random.normal(ks[0], (vocab, dim),
                                            jnp.float32)).astype(jnp.bfloat16),
        "in_res_w": wpad(ks[1], (vit_dim, dim), (vit_p, dim_p)),
        "in_res_b": jnp.zeros((1, dim_p), jnp.float32),
        "out_res_w": wpad(ks[2], (dim, vit_dim), (dim_p, vit_p)),
        "out_res_b": jnp.zeros((1, vit_p), jnp.float32),
        "llm_w1": wpad(ks[3], (dim, dim), (dim_p, dim_p)),
        "llm_b1": jnp.zeros((1, dim_p), jnp.float32),
        "llm_w2": wpad(ks[4], (dim, dim), (dim_p, dim_p)),
        "llm_b2": jnp.zeros((1, dim_p), jnp.float32),
        "lm_head_w": wpad(ks[5], (dim, vocab), (dim_p, voc_p)),
        # padded vocab columns get a huge-negative bias so exp() kills them
        "lm_head_b": jnp.pad(jnp.zeros((1, vocab), jnp.float32),
                             ((0, 0), (0, voc_p - vocab)),
                             constant_values=-1e30),
    }


# ----------------------------------------------------------------------------
# ContinuousLVLM.forward — jitted device core (pure JAX + Pallas, no host sync)
# ----------------------------------------------------------------------------
@partial(jax.jit, static_argnames=("has_cmp", "has_gen",
                                   "lm_loss_scale", "rec_loss_scale"))
def _forward_core(params, input_ids, labels, image_embeds,
                  cmp_idx, cmp_rows, cmp_cols,
                  gen_idx, gen_rows, gen_cols,
                  *, has_cmp, has_gen, lm_loss_scale, rec_loss_scale):
    # 1. token embedding lookup (bf16 table halves gather traffic)
    input_embeds = params["tok_embed"][input_ids]              # (bz, sq, D) bf16
    bz, sq, dim = input_embeds.shape
    T, E = image_embeds.shape[1], image_embeds.shape[2]

    # 2. input resampler on comprehension images, scatter into the sequence
    if has_cmp:
        img_cmp = image_embeds[cmp_idx]                        # (n_cmp, T, E)
        n_cmp = img_cmp.shape[0]
        img_lm = pallas_linear(img_cmp.reshape(n_cmp * T, E),
                               params["in_res_w"], params["in_res_b"],
                               out_features=dim, out_dtype=jnp.bfloat16)
        input_embeds = input_embeds.at[cmp_rows, cmp_cols].set(img_lm)

    # 3. synthetic llm: fused residual GELU-MLP block, bf16 hidden states
    x = input_embeds.reshape(bz * sq, dim)
    h = pallas_mlp_block(x, params["llm_w1"], params["llm_b1"],
                         params["llm_w2"], params["llm_b2"],
                         out_features=dim)                     # (bz*sq, D) bf16
    last_hidden_state = h.reshape(bz, sq, dim)

    # HF causal-LM loss: instead of materializing a shifted hidden-state copy,
    # shift the (tiny) label array and feed the full hidden states to the
    # fused LM-head + cross-entropy kernel (logits never hit HBM).
    shift_labels = jnp.concatenate(
        [labels[:, 1:], jnp.full((bz, 1), -100, labels.dtype)],
        axis=1).reshape(-1)
    per_row_nll = pallas_lm_head_cross_entropy(
        h, params["lm_head_w"], params["lm_head_b"], shift_labels)
    valid_cnt = jnp.sum((shift_labels != -100).astype(jnp.float32))
    lm_loss = jnp.sum(per_row_nll) / jnp.maximum(valid_cnt, 1.0)

    # 4. image reconstruction branch (output resampler fused with MSE)
    if has_gen:
        target = image_embeds[gen_idx]                         # (n_gen, T, E)
        n_gen = target.shape[0]
        out_hidden = last_hidden_state[gen_rows, gen_cols].reshape(n_gen * T, dim)
        recon_flat, rec_loss = pallas_out_resampler_mse(
            out_hidden, params["out_res_w"], params["out_res_b"],
            jax.lax.stop_gradient(target.reshape(n_gen * T, E)),
            out_features=E)
        recon_image_embeds = recon_flat.reshape(n_gen, T, E)
    else:
        # No generation targets: the torch fallback contributes exactly 0 to
        # the loss, so skip the wasted out-resampler matmul + MSE entirely.
        # TODO(synk): torch fallback runs output_resampler on random hidden
        # states; skipped here because its loss is multiplied by 0.0 anyway.
        rec_loss = jnp.float32(0.0)
        recon_image_embeds = jnp.zeros((bz, T, E), jnp.float32)

    total_loss = lm_loss_scale * lm_loss + rec_loss_scale * rec_loss
    return {"total_loss": total_loss, "lm_loss": lm_loss, "rec_loss": rec_loss,
            "image_embeds": recon_image_embeds}


def continuous_lvlm_forward(params, input_ids, attention_mask, labels,
                            image_embeds, embeds_gen_mask, embeds_cmp_mask,
                            ids_gen_mask, ids_cmp_mask,
                            lm_loss_scale=1.0, rec_loss_scale=1.0):
    # Host-side (once, before tracing): boolean masks -> static-shape index
    # arrays so the entire device-side forward sits under a single jit.
    cmp_idx = np.nonzero(np.asarray(embeds_cmp_mask))[0]
    gen_idx = np.nonzero(np.asarray(embeds_gen_mask))[0]
    cmp_rows, cmp_cols = np.nonzero(np.asarray(ids_cmp_mask))
    gen_rows, gen_cols = np.nonzero(np.asarray(ids_gen_mask))
    has_cmp = bool(cmp_idx.size > 0)
    has_gen = bool(gen_idx.size > 0)

    out = _forward_core(
        params, jnp.asarray(input_ids), jnp.asarray(labels),
        jnp.asarray(image_embeds, jnp.float32),
        jnp.asarray(cmp_idx, jnp.int32), jnp.asarray(cmp_rows, jnp.int32),
        jnp.asarray(cmp_cols, jnp.int32),
        jnp.asarray(gen_idx, jnp.int32), jnp.asarray(gen_rows, jnp.int32),
        jnp.asarray(gen_cols, jnp.int32),
        has_cmp=has_cmp, has_gen=has_gen,
        lm_loss_scale=float(lm_loss_scale),
        rec_loss_scale=float(rec_loss_scale))
    out = dict(out)
    out["has_image_output"] = has_gen
    return out


# ----------------------------------------------------------------------------
# Demo
# ----------------------------------------------------------------------------
if __name__ == "__main__":
    VOCAB = 128   # llm vocab size
    DIM = 32      # llm hidden dim
    VIT = 64      # resampler embed_dim (vision feature dim)
    T = 4         # num_queries (image tokens per image)
    BZ, SQ = 2, 16

    key = jax.random.PRNGKey(0)
    k_par, k_ids, k_img = jax.random.split(key, 3)

    params = init_params(k_par, VOCAB, DIM, VIT)

    input_ids = jax.random.randint(k_ids, (BZ, SQ), 0, VOCAB, dtype=jnp.int32)
    attention_mask = jnp.ones((BZ, SQ), jnp.int32)

    # image 0 is a comprehension image placed in sample 0 (positions 2..5);
    # image 1 is a generation target produced by sample 1 (positions 8..11).
    ids_cmp_mask = np.zeros((BZ, SQ), dtype=bool)
    ids_cmp_mask[0, 2:2 + T] = True
    ids_gen_mask = np.zeros((BZ, SQ), dtype=bool)
    ids_gen_mask[1, 8:8 + T] = True
    embeds_cmp_mask = np.array([True, False])
    embeds_gen_mask = np.array([False, True])

    image_embeds = jax.random.normal(k_img, (2, T, VIT), jnp.float32)

    labels = np.asarray(input_ids).copy()
    labels[ids_cmp_mask] = -100          # ignore image-placeholder positions
    labels = jnp.asarray(labels, dtype=jnp.int32)

    out = continuous_lvlm_forward(
        params,
        input_ids,
        attention_mask,
        labels,
        image_embeds,
        embeds_gen_mask,
        embeds_cmp_mask,
        ids_gen_mask,
        ids_cmp_mask,
        lm_loss_scale=1.0,
        rec_loss_scale=1.0,
    )

    jax.block_until_ready(out["total_loss"])
    jax.block_until_ready(out["image_embeds"])
    assert np.isfinite(float(out["total_loss"]))
    assert np.isfinite(float(out["lm_loss"]))
    assert np.isfinite(float(out["rec_loss"]))
    assert out["image_embeds"].shape == (1, T, VIT)
    print("KERNEL_OK")
</pallas_src>

<mosaic_0001>
module attributes {stable_mosaic.version = 11 : i64} {
  func.func @_matmul_kernel(%arg0: i32, %arg1: i32, %arg2: i32, %arg3: memref<16x128xbf16, #tpu.memory_space<vmem>>, %arg4: memref<128x128xbf16, #tpu.memory_space<vmem>>, %arg5: memref<1x128xf32, #tpu.memory_space<vmem>>, %arg6: memref<16x128xbf16, #tpu.memory_space<vmem>>, %arg7: memref<16x128xf32, #tpu.memory_space<vmem>>) attributes {dimension_semantics = [#tpu.dimension_semantics<parallel>, #tpu.dimension_semantics<parallel>, #tpu.dimension_semantics<arbitrary>], iteration_bounds = array<i64: 1, 1, 1>, scalar_prefetch = 0 : i64, scratch_operands = 1 : i64, tpu.core_type = #tpu.core_type<tc>, window_params = [{transform_indices = @transform_0, window_bounds = array<i64: 16, 128>}, {transform_indices = @transform_1, window_bounds = array<i64: 128, 128>}, {transform_indices = @transform_2, window_bounds = array<i64: 1, 128>}, {transform_indices = @transform_3, window_bounds = array<i64: 16, 128>}]} {
    %c0_i32 = arith.constant 0 : i32
    %0 = arith.cmpi eq, %arg2, %c0_i32 : i32
    %1 = arith.extui %0 : i1 to i32
    %c0_i32_0 = arith.constant 0 : i32
    %2 = arith.cmpi ne, %1, %c0_i32_0 : i32
    scf.if %2 {
      %c0_10 = arith.constant 0 : index
      %c0_11 = arith.constant 0 : index
      %12 = vector.load %arg5[%c0_10, %c0_11] : memref<1x128xf32, #tpu.memory_space<vmem>>, vector<1x128xf32>
      %13 = vector.shape_cast %12 : vector<1x128xf32> to vector<1x128xf32>
      %14 = vector.broadcast %13 : vector<1x128xf32> to vector<16x128xf32>
      %c0_12 = arith.constant 0 : index
      %c0_13 = arith.constant 0 : index
      %15 = vector.load %arg7[%c0_12, %c0_13] : memref<16x128xf32, #tpu.memory_space<vmem>>, vector<16x128xf32>
      tpu.vector_store %arg7[%c0_12, %c0_13], %14 {strides = array<i32>} : memref<16x128xf32, #tpu.memory_space<vmem>>, vector<16x128xf32>,
    } else {
    }
    %c0 = arith.constant 0 : index
    %c0_1 = arith.constant 0 : index
    %3 = vector.load %arg7[%c0, %c0_1] : memref<16x128xf32, #tpu.memory_space<vmem>>, vector<16x128xf32>
    %c0_2 = arith.constant 0 : index
    %c0_3 = arith.constant 0 : index
    %4 = vector.load %arg3[%c0_2, %c0_3] : memref<16x128xbf16, #tpu.memory_space<vmem>>, vector<16x128xbf16>
    %c0_4 = arith.constant 0 : index
    %c0_5 = arith.constant 0 : index
    %5 = vector.load %arg4[%c0_4, %c0_5] : memref<128x128xbf16, #tpu.memory_space<vmem>>, vector<128x128xbf16>
    %cst = arith.constant dense<0.000000e+00> : vector<16x128xf32>
    %6 = tpu.matmul %4, %5, %cst {dimension_numbers = #tpu.dot_dimension_numbers<[1], [0], [0], [1], [0, 0, 1, 1], [], []>} : vector<16x128xbf16>, vector<128x128xbf16>, vector<16x128xf32> -> vector<16x128xf32>
    %7 = arith.addf %3, %6 : vector<16x128xf32>
    %c0_6 = arith.constant 0 : index
    %c0_7 = arith.constant 0 : index
    %8 = vector.load %arg7[%c0_6, %c0_7] : memref<16x128xf32, #tpu.memory_space<vmem>>, vector<16x128xf32>
    tpu.vector_store %arg7[%c0_6, %c0_7], %7 {strides = array<i32>} : memref<16x128xf32, #tpu.memory_space<vmem>>, vector<16x128xf32>,
    %c0_i32_8 = arith.constant 0 : i32
    %9 = arith.cmpi eq, %arg2, %c0_i32_8 : i32
    %10 = arith.extui %9 : i1 to i32
    %c0_i32_9 = arith.constant 0 : i32
    %11 = arith.cmpi ne, %10, %c0_i32_9 : i32
    scf.if %11 {
      %c0_10 = arith.constant 0 : index
      %c0_11 = arith.constant 0 : index
      %12 = vector.load %arg7[%c0_10, %c0_11] : memref<16x128xf32, #tpu.memory_space<vmem>>, vector<16x128xf32>
      %13 = arith.truncf %12 : vector<16x128xf32> to vector<16x128xbf16>
      %c0_12 = arith.constant 0 : index
      %c0_13 = arith.constant 0 : index
      %14 = vector.load %arg6[%c0_12, %c0_13] : memref<16x128xbf16, #tpu.memory_space<vmem>>, vector<16x128xbf16>
      tpu.vector_store %arg6[%c0_12, %c0_13], %13 {strides = array<i32>} : memref<16x128xbf16, #tpu.memory_space<vmem>>, vector<16x128xbf16>,
    } else {
    }
    return
  }
  func.func @transform_0(%arg0: i32, %arg1: i32, %arg2: i32) -> (i32, i32) {
    %c0_i32 = arith.constant 0 : i32
    return %arg0, %arg2 : i32, i32
  }
  func.func @transform_1(%arg0: i32, %arg1: i32, %arg2: i32) -> (i32, i32) {
    %c0_i32 = arith.constant 0 : i32
    return %arg2, %arg1 : i32, i32
  }
  func.func @transform_2(%arg0: i32, %arg1: i32, %arg2: i32) -> (i32, i32) {
    %c0_i32 = arith.constant 0 : i32
    %c0_i32_0 = arith.constant 0 : i32
    return %c0_i32, %arg1 : i32, i32
  }
  func.func @transform_3(%arg0: i32, %arg1: i32, %arg2: i32) -> (i32, i32) {
    %c0_i32 = arith.constant 0 : i32
    return %arg0, %arg1 : i32, i32
  }
}

module attributes {stable_mosaic.version = 11 : i64} {
  func.func @_mlp_block_kernel(%arg0: i32, %arg1: memref<32x128xbf16, #tpu.memory_space<vmem>>, %arg2: memref<128x128xbf16, #tpu.memory_space<vmem>>, %arg3: memref<1x128xf32, #tpu.memory_space<vmem>>, %arg4: memref<128x128xbf16, #tpu.memory_space<vmem>>, %arg5: memref<1x128xf32, #tpu.memory_space<vmem>>, %arg6: memref<32x128xbf16, #tpu.memory_space<vmem>>) attributes {dimension_semantics = [#tpu.dimension_semantics<parallel>], iteration_bounds = array<i64: 1>, scalar_prefetch = 0 : i64, scratch_operands = 0 : i64, tpu.core_type = #tpu.core_type<tc>, window_params = [{transform_indices = @transform_0, window_bounds = array<i64: 32, 128>}, {pipeline_mode = #tpu.pipeline_mode<synchronous>, transform_indices = @transform_1, window_bounds = array<i64: 128, 128>}, {pipeline_mode = #tpu.pipeline_mode<synchronous>, transform_indices = @transform_2, window_bounds = array<i64: 1, 128>}, {pipeline_mode = #tpu.pipeline_mode<synchronous>, transform_indices = @transform_3, window_bounds = array<i64: 128, 128>}, {pipeline_mode = #tpu.pipeline_mode<synchronous>, transform_indices = @transform_4, window_bounds = array<i64: 1, 128>}, {transform_indices = @transform_5, window_bounds = array<i64: 32, 128>}]} {
    %c0 = arith.constant 0 : index
    %c0_0 = arith.constant 0 : index
    %0 = vector.load %arg1[%c0, %c0_0] : memref<32x128xbf16, #tpu.memory_space<vmem>>, vector<32x128xbf16>
    %c0_1 = arith.constant 0 : index
    %c0_2 = arith.constant 0 : index
    %1 = vector.load %arg2[%c0_1, %c0_2] : memref<128x128xbf16, #tpu.memory_space<vmem>>, vector<128x128xbf16>
    %cst = arith.constant dense<0.000000e+00> : vector<32x128xf32>
    %2 = tpu.matmul %0, %1, %cst {dimension_numbers = #tpu.dot_dimension_numbers<[1], [0], [0], [1], [0, 0, 1, 1], [], []>} : vector<32x128xbf16>, vector<128x128xbf16>, vector<32x128xf32> -> vector<32x128xf32>
    %c0_3 = arith.constant 0 : index
    %c0_4 = arith.constant 0 : index
    %3 = vector.load %arg3[%c0_3, %c0_4] : memref<1x128xf32, #tpu.memory_space<vmem>>, vector<1x128xf32>
    %4 = vector.broadcast %3 : vector<1x128xf32> to vector<32x128xf32>
    %5 = arith.addf %2, %4 : vector<32x128xf32>
    %6 = arith.mulf %5, %5 : vector<32x128xf32>
    %7 = arith.mulf %5, %6 : vector<32x128xf32>
    %cst_5 = arith.constant 4.471500e-02 : f32
    %8 = vector.broadcast %cst_5 : f32 to vector<32x128xf32>
    %9 = arith.mulf %8, %7 : vector<32x128xf32>
    %10 = arith.addf %5, %9 : vector<32x128xf32>
    %cst_6 = arith.constant 0.797884583 : f32
    %11 = vector.broadcast %cst_6 : f32 to vector<32x128xf32>
    %12 = arith.mulf %11, %10 : vector<32x128xf32>
    %13 = math.tanh %12 : vector<32x128xf32>
    %cst_7 = arith.constant 1.000000e+00 : f32
    %14 = vector.broadcast %cst_7 : f32 to vector<32x128xf32>
    %15 = arith.addf %14, %13 : vector<32x128xf32>
    %cst_8 = arith.constant 5.000000e-01 : f32
    %16 = vector.broadcast %cst_8 : f32 to vector<32x128xf32>
    %17 = arith.mulf %16, %15 : vector<32x128xf32>
    %18 = arith.mulf %5, %17 : vector<32x128xf32>
    %19 = arith.truncf %18 : vector<32x128xf32> to vector<32x128xbf16>
    %c0_9 = arith.constant 0 : index
    %c0_10 = arith.constant 0 : index
    %20 = vector.load %arg4[%c0_9, %c0_10] : memref<128x128xbf16, #tpu.memory_space<vmem>>, vector<128x128xbf16>
    %cst_11 = arith.constant dense<0.000000e+00> : vector<32x128xf32>
    %21 = tpu.matmul %19, %20, %cst_11 {dimension_numbers = #tpu.dot_dimension_numbers<[1], [0], [0], [1], [0, 0, 1, 1], [], []>} : vector<32x128xbf16>, vector<128x128xbf16>, vector<32x128xf32> -> vector<32x128xf32>
    %c0_12 = arith.constant 0 : index
    %c0_13 = arith.constant 0 : index
    %22 = vector.load %arg5[%c0_12, %c0_13] : memref<1x128xf32, #tpu.memory_space<vmem>>, vector<1x128xf32>
    %23 = vector.broadcast %22 : vector<1x128xf32> to vector<32x128xf32>
    %24 = arith.addf %21, %23 : vector<32x128xf32>
    %25 = arith.extf %0 : vector<32x128xbf16> to vector<32x128xf32>
    %26 = arith.addf %24, %25 : vector<32x128xf32>
    %27 = arith.truncf %26 : vector<32x128xf32> to vector<32x128xbf16>
    %c0_14 = arith.constant 0 : index
    %c0_15 = arith.constant 0 : index
    %28 = vector.load %arg6[%c0_14, %c0_15] : memref<32x128xbf16, #tpu.memory_space<vmem>>, vector<32x128xbf16>
    tpu.vector_store %arg6[%c0_14, %c0_15], %27 {strides = array<i32>} : memref<32x128xbf16, #tpu.memory_space<vmem>>, vector<32x128xbf16>,
    return
  }
  func.func @transform_0(%arg0: i32) -> (i32, i32) {
    %c0_i32 = arith.constant 0 : i32
    %c0_i32_0 = arith.constant 0 : i32
    return %arg0, %c0_i32 : i32, i32
  }
  func.func @transform_1(%arg0: i32) -> (i32, i32) {
    %c0_i32 = arith.constant 0 : i32
    %c0_i32_0 = arith.constant 0 : i32
    %c0_i32_1 = arith.constant 0 : i32
    return %c0_i32, %c0_i32_0 : i32, i32
  }
  func.func @transform_2(%arg0: i32) -> (i32, i32) {
    %c0_i32 = arith.constant 0 : i32
    %c0_i32_0 = arith.constant 0 : i32
    %c0_i32_1 = arith.constant 0 : i32
    return %c0_i32, %c0_i32_0 : i32, i32
  }
  func.func @transform_3(%arg0: i32) -> (i32, i32) {
    %c0_i32 = arith.constant 0 : i32
    %c0_i32_0 = arith.constant 0 : i32
    %c0_i32_1 = arith.constant 0 : i32
    return %c0_i32, %c0_i32_0 : i32, i32
  }
  func.func @transform_4(%arg0: i32) -> (i32, i32) {
    %c0_i32 = arith.constant 0 : i32
    %c0_i32_0 = arith.constant 0 : i32
    %c0_i32_1 = arith.constant 0 : i32
    return %c0_i32, %c0_i32_0 : i32, i32
  }
  func.func @transform_5(%arg0: i32) -> (i32, i32) {
    %c0_i32 = arith.constant 0 : i32
    %c0_i32_0 = arith.constant 0 : i32
    return %arg0, %c0_i32 : i32, i32
  }
}

module attributes {stable_mosaic.version = 11 : i64} {
  func.func @_out_resampler_mse_kernel(%arg0: i32, %arg1: i32, %arg2: memref<16x128xbf16, #tpu.memory_space<vmem>>, %arg3: memref<128x128xbf16, #tpu.memory_space<vmem>>, %arg4: memref<1x128xf32, #tpu.memory_space<vmem>>, %arg5: memref<16x128xf32, #tpu.memory_space<vmem>>, %arg6: memref<16x128xf32, #tpu.memory_space<vmem>>, %arg7: memref<16x1xf32, #tpu.memory_space<vmem>>) attributes {dimension_semantics = [#tpu.dimension_semantics<parallel>, #tpu.dimension_semantics<arbitrary>], iteration_bounds = array<i64: 1, 1>, scalar_prefetch = 0 : i64, scratch_operands = 0 : i64, tpu.core_type = #tpu.core_type<tc>, window_params = [{transform_indices = @transform_0, window_bounds = array<i64: 16, 128>}, {transform_indices = @transform_1, window_bounds = array<i64: 128, 128>}, {transform_indices = @transform_2, window_bounds = array<i64: 1, 128>}, {transform_indices = @transform_3, window_bounds = array<i64: 16, 128>}, {transform_indices = @transform_4, window_bounds = array<i64: 16, 128>}, {transform_indices = @transform_5, window_bounds = array<i64: 16, 1>}]} {
    %c0_i32 = arith.constant 0 : i32
    %0 = arith.cmpi eq, %arg1, %c0_i32 : i32
    %1 = arith.extui %0 : i1 to i32
    %c0_i32_0 = arith.constant 0 : i32
    %2 = arith.cmpi ne, %1, %c0_i32_0 : i32
    scf.if %2 {
      %cst_15 = arith.constant 0.000000e+00 : f32
      %18 = vector.broadcast %cst_15 : f32 to vector<16x1xf32>
      %c0_16 = arith.constant 0 : index
      %c0_17 = arith.constant 0 : index
      %19 = vector.load %arg7[%c0_16, %c0_17] : memref<16x1xf32, #tpu.memory_space<vmem>>, vector<16x1xf32>
      tpu.vector_store %arg7[%c0_16, %c0_17], %18 {strides = array<i32>} : memref<16x1xf32, #tpu.memory_space<vmem>>, vector<16x1xf32>,
    } else {
    }
    %c0 = arith.constant 0 : index
    %c0_1 = arith.constant 0 : index
    %3 = vector.load %arg2[%c0, %c0_1] : memref<16x128xbf16, #tpu.memory_space<vmem>>, vector<16x128xbf16>
    %c0_2 = arith.constant 0 : index
    %c0_3 = arith.constant 0 : index
    %4 = vector.load %arg3[%c0_2, %c0_3] : memref<128x128xbf16, #tpu.memory_space<vmem>>, vector<128x128xbf16>
    %cst = arith.constant dense<0.000000e+00> : vector<16x128xf32>
    %5 = tpu.matmul %3, %4, %cst {dimension_numbers = #tpu.dot_dimension_numbers<[1], [0], [0], [1], [0, 0, 1, 1], [], []>} : vector<16x128xbf16>, vector<128x128xbf16>, vector<16x128xf32> -> vector<16x128xf32>
    %c0_4 = arith.constant 0 : index
    %c0_5 = arith.constant 0 : index
    %6 = vector.load %arg4[%c0_4, %c0_5] : memref<1x128xf32, #tpu.memory_space<vmem>>, vector<1x128xf32>
    %7 = vector.broadcast %6 : vector<1x128xf32> to vector<16x128xf32>
    %8 = arith.addf %5, %7 : vector<16x128xf32>
    %c0_6 = arith.constant 0 : index
    %c0_7 = arith.constant 0 : index
    %9 = vector.load %arg6[%c0_6, %c0_7] : memref<16x128xf32, #tpu.memory_space<vmem>>, vector<16x128xf32>
    tpu.vector_store %arg6[%c0_6, %c0_7], %8 {strides = array<i32>} : memref<16x128xf32, #tpu.memory_space<vmem>>, vector<16x128xf32>,
    %c0_8 = arith.constant 0 : index
    %c0_9 = arith.constant 0 : index
    %10 = vector.load %arg5[%c0_8, %c0_9] : memref<16x128xf32, #tpu.memory_space<vmem>>, vector<16x128xf32>
    %11 = arith.subf %8, %10 : vector<16x128xf32>
    %c0_10 = arith.constant 0 : index
    %c0_11 = arith.constant 0 : index
    %12 = vector.load %arg7[%c0_10, %c0_11] : memref<16x1xf32, #tpu.memory_space<vmem>>, vector<16x1xf32>
    %13 = arith.mulf %11, %11 : vector<16x128xf32>
    %cst_12 = arith.constant dense<0.000000e+00> : vector<16xf32>
    %14 = vector.multi_reduction <add>, %13, %cst_12 [1] : vector<16x128xf32> to vector<16xf32>
    %15 = vector.shape_cast %14 : vector<16xf32> to vector<16x1xf32>
    %16 = arith.addf %12, %15 : vector<16x1xf32>
    %c0_13 = arith.constant 0 : index
    %c0_14 = arith.constant 0 : index
    %17 = vector.load %arg7[%c0_13, %c0_14] : memref<16x1xf32, #tpu.memory_space<vmem>>, vector<16x1xf32>
    tpu.vector_store %arg7[%c0_13, %c0_14], %16 {strides = array<i32>} : memref<16x1xf32, #tpu.memory_space<vmem>>, vector<16x1xf32>,
    return
  }
  func.func @transform_0(%arg0: i32, %arg1: i32) -> (i32, i32) {
    %c0_i32 = arith.constant 0 : i32
    %c0_i32_0 = arith.constant 0 : i32
    return %arg0, %c0_i32 : i32, i32
  }
  func.func @transform_1(%arg0: i32, %arg1: i32) -> (i32, i32) {
    %c0_i32 = arith.constant 0 : i32
    %c0_i32_0 = arith.constant 0 : i32
    return %c0_i32, %arg1 : i32, i32
  }
  func.func @transform_2(%arg0: i32, %arg1: i32) -> (i32, i32) {
    %c0_i32 = arith.constant 0 : i32
    %c0_i32_0 = arith.constant 0 : i32
    return %c0_i32, %arg1 : i32, i32
  }
  func.func @transform_3(%arg0: i32, %arg1: i32) -> (i32, i32) {
    %c0_i32 = arith.constant 0 : i32
    return %arg0, %arg1 : i32, i32
  }
  func.func @transform_4(%arg0: i32, %arg1: i32) -> (i32, i32) {
    %c0_i32 = arith.constant 0 : i32
    return %arg0, %arg1 : i32, i32
  }
  func.func @transform_5(%arg0: i32, %arg1: i32) -> (i32, i32) {
    %c0_i32 = arith.constant 0 : i32
    %c0_i32_0 = arith.constant 0 : i32
    return %arg0, %c0_i32 : i32, i32
  }
}

module attributes {stable_mosaic.version = 11 : i64} {
  func.func @_lmhead_ce_kernel(%arg0: i32, %arg1: i32, %arg2: memref<32x128xbf16, #tpu.memory_space<vmem>>, %arg3: memref<128x128xbf16, #tpu.memory_space<vmem>>, %arg4: memref<1x128xf32, #tpu.memory_space<vmem>>, %arg5: memref<32x1xi32, #tpu.memory_space<vmem>>, %arg6: memref<32x1xf32, #tpu.memory_space<vmem>>, %arg7: memref<32x1xf32, #tpu.memory_space<vmem>>, %arg8: memref<32x1xf32, #tpu.memory_space<vmem>>, %arg9: memref<32x1xf32, #tpu.memory_space<vmem>>) attributes {dimension_semantics = [#tpu.dimension_semantics<parallel>, #tpu.dimension_semantics<arbitrary>], iteration_bounds = array<i64: 1, 1>, scalar_prefetch = 0 : i64, scratch_operands = 3 : i64, tpu.core_type = #tpu.core_type<tc>, window_params = [{transform_indices = @transform_0, window_bounds = array<i64: 32, 128>}, {transform_indices = @transform_1, window_bounds = array<i64: 128, 128>}, {transform_indices = @transform_2, window_bounds = array<i64: 1, 128>}, {transform_indices = @transform_3, window_bounds = array<i64: 32, 1>}, {transform_indices = @transform_4, window_bounds = array<i64: 32, 1>}]} {
    %c0_i32 = arith.constant 0 : i32
    %0 = arith.cmpi eq, %arg1, %c0_i32 : i32
    %1 = arith.extui %0 : i1 to i32
    %c0_i32_0 = arith.constant 0 : i32
    %2 = arith.cmpi ne, %1, %c0_i32_0 : i32
    scf.if %2 {
      %cst_26 = arith.constant -1.000000e+30 : f32
      %43 = vector.broadcast %cst_26 : f32 to vector<32x1xf32>
      %c0_27 = arith.constant 0 : index
      %c0_28 = arith.constant 0 : index
      %44 = vector.load %arg7[%c0_27, %c0_28] : memref<32x1xf32, #tpu.memory_space<vmem>>, vector<32x1xf32>
      tpu.vector_store %arg7[%c0_27, %c0_28], %43 {strides = array<i32>} : memref<32x1xf32, #tpu.memory_space<vmem>>, vector<32x1xf32>,
      %cst_29 = arith.constant 0.000000e+00 : f32
      %45 = vector.broadcast %cst_29 : f32 to vector<32x1xf32>
      %c0_30 = arith.constant 0 : index
      %c0_31 = arith.constant 0 : index
      %46 = vector.load %arg8[%c0_30, %c0_31] : memref<32x1xf32, #tpu.memory_space<vmem>>, vector<32x1xf32>
      tpu.vector_store %arg8[%c0_30, %c0_31], %45 {strides = array<i32>} : memref<32x1xf32, #tpu.memory_space<vmem>>, vector<32x1xf32>,
      %cst_32 = arith.constant 0.000000e+00 : f32
      %47 = vector.broadcast %cst_32 : f32 to vector<32x1xf32>
      %c0_33 = arith.constant 0 : index
      %c0_34 = arith.constant 0 : index
      %48 = vector.load %arg9[%c0_33, %c0_34] : memref<32x1xf32, #tpu.memory_space<vmem>>, vector<32x1xf32>
      tpu.vector_store %arg9[%c0_33, %c0_34], %47 {strides = array<i32>} : memref<32x1xf32, #tpu.memory_space<vmem>>, vector<32x1xf32>,
    } else {
    }
    %c0 = arith.constant 0 : index
    %c0_1 = arith.constant 0 : index
    %3 = vector.load %arg2[%c0, %c0_1] : memref<32x128xbf16, #tpu.memory_space<vmem>>, vector<32x128xbf16>
    %c0_2 = arith.constant 0 : index
    %c0_3 = arith.constant 0 : index
    %4 = vector.load %arg3[%c0_2, %c0_3] : memref<128x128xbf16, #tpu.memory_space<vmem>>, vector<128x128xbf16>
    %cst = arith.constant dense<0.000000e+00> : vector<32x128xf32>
    %5 = tpu.matmul %3, %4, %cst {dimension_numbers = #tpu.dot_dimension_numbers<[1], [0], [0], [1], [0, 0, 1, 1], [], []>} : vector<32x128xbf16>, vector<128x128xbf16>, vector<32x128xf32> -> vector<32x128xf32>
    %c0_4 = arith.constant 0 : index
    %c0_5 = arith.constant 0 : index
    %6 = vector.load %arg4[%c0_4, %c0_5] : memref<1x128xf32, #tpu.memory_space<vmem>>, vector<1x128xf32>
    %7 = vector.broadcast %6 : vector<1x128xf32> to vector<32x128xf32>
    %8 = arith.addf %5, %7 : vector<32x128xf32>
    %c0_6 = arith.constant 0 : index
    %c0_7 = arith.constant 0 : index
    %9 = vector.load %arg5[%c0_6, %c0_7] : memref<32x1xi32, #tpu.memory_space<vmem>>, vector<32x1xi32>
    %10 = tpu.iota {dimensions = array<i32: 1>} : vector<1x128xi32>
    %c128_i32 = arith.constant 128 : i32
    %11 = arith.muli %arg1, %c128_i32 : i32
    %12 = vector.broadcast %11 : i32 to vector<1x128xi32>
    %13 = arith.addi %10, %12 : vector<1x128xi32>
    %c0_8 = arith.constant 0 : index
    %c0_9 = arith.constant 0 : index
    %14 = vector.load %arg7[%c0_8, %c0_9] : memref<32x1xf32, #tpu.memory_space<vmem>>, vector<32x1xf32>
    %cst_10 = arith.constant dense<0xFF800000> : vector<32xf32>
    %15 = vector.multi_reduction <maximumf>, %8, %cst_10 [1] : vector<32x128xf32> to vector<32xf32>
    %16 = vector.shape_cast %15 : vector<32xf32> to vector<32x1xf32>
    %17 = arith.maximumf %14, %16 : vector<32x1xf32>
    %c0_11 = arith.constant 0 : index
    %c0_12 = arith.constant 0 : index
    %18 = vector.load %arg8[%c0_11, %c0_12] : memref<32x1xf32, #tpu.memory_space<vmem>>, vector<32x1xf32>
    %19 = arith.subf %14, %17 : vector<32x1xf32>
    %20 = math.exp %19 : vector<32x1xf32>
    %21 = arith.mulf %18, %20 : vector<32x1xf32>
    %22 = vector.broadcast %17 : vector<32x1xf32> to vector<32x128xf32>
    %23 = arith.subf %8, %22 : vector<32x128xf32>
    %24 = math.exp %23 : vector<32x128xf32>
    %cst_13 = arith.constant dense<0.000000e+00> : vector<32xf32>
    %25 = vector.multi_reduction <add>, %24, %cst_13 [1] : vector<32x128xf32> to vector<32xf32>
    %26 = vector.shape_cast %25 : vector<32xf32> to vector<32x1xf32>
    %27 = arith.addf %21, %26 : vector<32x1xf32>
    %c0_14 = arith.constant 0 : index
    %c0_15 = arith.constant 0 : index
    %28 = vector.load %arg8[%c0_14, %c0_15] : memref<32x1xf32, #tpu.memory_space<vmem>>, vector<32x1xf32>
    tpu.vector_store %arg8[%c0_14, %c0_15], %27 {strides = array<i32>} : memref<32x1xf32, #tpu.memory_space<vmem>>, vector<32x1xf32>,
    %c0_16 = arith.constant 0 : index
    %c0_17 = arith.constant 0 : index
    %29 = vector.load %arg7[%c0_16, %c0_17] : memref<32x1xf32, #tpu.memory_space<vmem>>, vector<32x1xf32>
    tpu.vector_store %arg7[%c0_16, %c0_17], %17 {strides = array<i32>} : memref<32x1xf32, #tpu.memory_space<vmem>>, vector<32x1xf32>,
    %c0_18 = arith.constant 0 : index
    %c0_19 = arith.constant 0 : index
    %30 = vector.load %arg9[%c0_18, %c0_19] : memref<32x1xf32, #tpu.memory_space<vmem>>, vector<32x1xf32>
    %31 = vector.broadcast %13 : vector<1x128xi32> to vector<32x128xi32>
    %32 = vector.broadcast %9 : vector<32x1xi32> to vector<32x128xi32>
    %33 = arith.cmpi eq, %31, %32 : vector<32x128xi32>
    %cst_20 = arith.constant 0.000000e+00 : f32
    %34 = vector.broadcast %cst_20 : f32 to vector<32x128xf32>
    %35 = arith.select %33, %8, %34 : vector<32x128xi1>, vector<32x128xf32>
    %cst_21 = arith.constant dense<0.000000e+00> : vector<32xf32>
    %36 = vector.multi_reduction <add>, %35, %cst_21 [1] : vector<32x128xf32> to vector<32xf32>
    %37 = vector.shape_cast %36 : vector<32xf32> to vector<32x1xf32>
    %38 = arith.addf %30, %37 : vector<32x1xf32>
    %c0_22 = arith.constant 0 : index
    %c0_23 = arith.constant 0 : index
    %39 = vector.load %arg9[%c0_22, %c0_23] : memref<32x1xf32, #tpu.memory_space<vmem>>, vector<32x1xf32>
    tpu.vector_store %arg9[%c0_22, %c0_23], %38 {strides = array<i32>} : memref<32x1xf32, #tpu.memory_space<vmem>>, vector<32x1xf32>,
    %c0_i32_24 = arith.constant 0 : i32
    %40 = arith.cmpi eq, %arg1, %c0_i32_24 : i32
    %41 = arith.extui %40 : i1 to i32
    %c0_i32_25 = arith.constant 0 : i32
    %42 = arith.cmpi ne, %41, %c0_i32_25 : i32
    scf.if %42 {
      %c-100_i32 = arith.constant -100 : i32
      %43 = vector.broadcast %c-100_i32 : i32 to vector<32x1xi32>
      %44 = arith.cmpi ne, %9, %43 : vector<32x1xi32>
      %45 = arith.extui %44 : vector<32x1xi1> to vector<32x1xi32>
      %46 = arith.sitofp %45 : vector<32x1xi32> to vector<32x1xf32>
      %c0_26 = arith.constant 0 : index
      %c0_27 = arith.constant 0 : index
      %47 = vector.load %arg7[%c0_26, %c0_27] : memref<32x1xf32, #tpu.memory_space<vmem>>, vector<32x1xf32>
      %c0_28 = arith.constant 0 : index
      %c0_29 = arith.constant 0 : index
      %48 = vector.load %arg8[%c0_28, %c0_29] : memref<32x1xf32, #tpu.memory_space<vmem>>, vector<32x1xf32>
      %49 = math.log %48 : vector<32x1xf32>
      %50 = arith.addf %47, %49 : vector<32x1xf32>
      %c0_30 = arith.constant 0 : index
      %c0_31 = arith.constant 0 : index
      %51 = vector.load %arg9[%c0_30, %c0_31] : memref<32x1xf32, #tpu.memory_space<vmem>>, vector<32x1xf32>
      %52 = arith.subf %50, %51 : vector<32x1xf32>
      %53 = arith.mulf %52, %46 : vector<32x1xf32>
      %c0_32 = arith.constant 0 : index
      %c0_33 = arith.constant 0 : index
      %54 = vector.load %arg6[%c0_32, %c0_33] : memref<32x1xf32, #tpu.memory_space<vmem>>, vector<32x1xf32>
      tpu.vector_store %arg6[%c0_32, %c0_33], %53 {strides = array<i32>} : memref<32x1xf32, #tpu.memory_space<vmem>>, vector<32x1xf32>,
    } else {
    }
    return
  }
  func.func @transform_0(%arg0: i32, %arg1: i32) -> (i32, i32) {
    %c0_i32 = arith.constant 0 : i32
    %c0_i32_0 = arith.constant 0 : i32
    return %arg0, %c0_i32 : i32, i32
  }
  func.func @transform_1(%arg0: i32, %arg1: i32) -> (i32, i32) {
    %c0_i32 = arith.constant 0 : i32
    %c0_i32_0 = arith.constant 0 : i32
    return %c0_i32, %arg1 : i32, i32
  }
  func.func @transform_2(%arg0: i32, %arg1: i32) -> (i32, i32) {
    %c0_i32 = arith.constant 0 : i32
    %c0_i32_0 = arith.constant 0 : i32
    return %c0_i32, %arg1 : i32, i32
  }
  func.func @transform_3(%arg0: i32, %arg1: i32) -> (i32, i32) {
    %c0_i32 = arith.constant 0 : i32
    %c0_i32_0 = arith.constant 0 : i32
    return %arg0, %c0_i32 : i32, i32
  }
  func.func @transform_4(%arg0: i32, %arg1: i32) -> (i32, i32) {
    %c0_i32 = arith.constant 0 : i32
    %c0_i32_0 = arith.constant 0 : i32
    return %arg0, %c0_i32 : i32, i32
  }
}

</mosaic_0001>

<bundles_post_ra>
// kernel: _forward_core.4
= control target key start
LH: loop header
LB: loop body
LE: loop exit
PB: predicated region body
PF: predicated region fallthrough
CT: control target
= control target key end

     0   :  { %8 = vsyncpa [#allocation4], 0  ;;  %s265_s12 = smov [#allocation3]   ;;  %s302_s0 = inlined_call_operand.vmem [shape: bf16[16,128], index: 0, kind: input, shape index: {}]   ;;  %s303_s1 = inlined_call_operand.hbm [shape: bf16[128,128], index: 1, kind: input, shape index: {}]   ;;  %s304_s2 = inlined_call_operand.vmem [shape: f32[1,128], index: 2, kind: input, shape index: {}]   ;;  %s305_s3 = inlined_call_operand.vmem [shape: bf16[16,128], index: 3, kind: output, shape index: {}]  }
   0x1   :  { %s16_s13 = sshll.u32 %s265_s12, 4  ;;  %s17_s13 = int_to_ptr.vmem [resolvable:$true] %s16_s13 }
   0x2   :  { %s251_s14 = scalar_lea.vmem %s17_s13, 1024  ;;  %p256_p1 = scmp.lt.s32.totalorder %s17_s13, %s17_s13 }
   0x3   :  { %p252_p0 = scmp.ne.s32.totalorder %s17_s13, %s251_s14  ;;  %p257_p2 = scmp.lt.s32.totalorder %s251_s14, %s251_s14 }
   0x5   :  { %p258_p3 = por %p257_p2, %p256_p1 }
   0x7   :  { %p259_p4 = pnand %p258_p3, %p252_p0 }
   0x9   :  { %262 = shalt.err (!%p259_p4)
}
   0xa   :  { %s266_s15 = smov 64   ;;  %s267_s16 = smov 4  }
   0xb   :  { %22 = dma.hbm_to_vmem [thread:$0]  %s303_s1, 1024, %s17_s13, [#allocation4], %s266_s15, %s266_s15, %s267_s16  }
   0xc   :  { %263 = dma.done.wait [#allocation4], 1024  }
   0xd   :  { %264 = vsyncadd [#allocation4], 4294966272  ;;  %v268_v0 = vmov 0.0   ;;  %vm269_vm0 = vmmov 0   ;;  %v234_v1 = vld [vmem:[#allocation3 + $0x38] sm:$0xff]   ;;  %v235_v2 = vld [vmem:[#allocation3 + $0x30] sm:$0xff]  }
   0xe   :  { %209 = vmatprep.subr.bf16.mxu0 %v268_v0  ;;  %225 = vmatprep.mubr.msk.bf16.mxu0 %vm269_vm0, %v268_v0  ;;  %v236_v3 = vld [vmem:[#allocation3 + $0x28] sm:$0xff]   ;;  %v237_v4 = vld [vmem:[#allocation3 + $0x20] sm:$0xff]   ;;  %v238_v5 = vld [vmem:[#allocation3 + $0x18] sm:$0xff]  }
   0xf   :  { %210 = vmatpush3.bf16.msra.mxu0 %v234_v1  ;;  %v239_v6 = vld [vmem:[#allocation3 + $0x10] sm:$0xff]   ;;  %v240_v7 = vld [vmem:[#allocation3 + $0x8] sm:$0xff]   ;;  %v241_v8 = vld [vmem:[#allocation3] sm:$0xff]  }
  0x10   :  { %211 = vmatprep.subr.bf16.mxu0 %v268_v0  ;;  %v242_v9 = vld [vmem:[%s302_s0] sm:$0xff]  }
  0x11   :  { %v181_v11 = vld [vmem:[%s304_s2] ss:$0 sm:$0xff] }
  0x13   :  { %212 = vmatpush3.bf16.msra.mxu0 %v235_v2 }
  0x14   :  { %213 = vmatprep.subr.bf16.mxu0 %v268_v0 }
  0x17   :  { %214 = vmatpush3.bf16.msra.mxu0 %v236_v3 }
  0x18   :  { %215 = vmatprep.subr.bf16.mxu0 %v268_v0 }
  0x1b   :  { %216 = vmatpush3.bf16.msra.mxu0 %v237_v4 }
  0x1c   :  { %217 = vmatprep.subr.bf16.mxu0 %v268_v0 }
  0x1f   :  { %218 = vmatpush3.bf16.msra.mxu0 %v238_v5 }
  0x20   :  { %219 = vmatprep.subr.bf16.mxu0 %v268_v0 }
  0x23   :  { %220 = vmatpush3.bf16.msra.mxu0 %v239_v6 }
  0x24   :  { %221 = vmatprep.subr.bf16.mxu0 %v268_v0 }
  0x27   :  { %222 = vmatpush3.bf16.msra.mxu0 %v240_v7 }
  0x28   :  { %223 = vmatprep.subr.bf16.mxu0 %v268_v0 }
  0x2b   :  { %224 = vmatpush3.bf16.msra.mxu0 %v241_v8 }
  0x2e   :  { %226 = vmatmul.mubr.bf16.vlgmr.msra.gmra.mxu0 %v242_v9 }
  0xee   :  { %v150_v10 = vpop.f32.mrf.mxu0 }
  0xef   :  { %v157_v14 = vadd.f32 %v181_v11, %v150_v10 }
  0xf0   :  { %v227_v12 = vpop.f32.mrf.mxu0 }
  0xf2   :  { %v153_v13 = vpop.f32.mrf.mxu0 }
  0xf3   :  { %v158_v15 = vadd.f32 %v181_v11, %v153_v13 }
  0xf4   :  { %v228_v16 = vpop.f32.mrf.mxu0 }
  0xf5   :  { %v198_v17 = vpack.c.bf16 %v158_v15, %v157_v14 }
  0xf7   :  { %199 = vst [vmem:[%s305_s3] sm:$0xff] %v198_v17  }
  0xf8   :  { %180 = vsyncpa [#allocation4], 1 }

// kernel: _forward_core.5
= control target key start
LH: loop header
LB: loop body
LE: loop exit
PB: predicated region body
PF: predicated region fallthrough
CT: control target
= control target key end

     0   :  { %s580_s1 = inlined_call_operand.vmem [shape: bf16[128,128], index: 1, kind: input, shape index: {}]   ;;  %s581_s0 = inlined_call_operand.vmem [shape: bf16[32,128], index: 0, kind: input, shape index: {}]   ;;  %s582_s3 = inlined_call_operand.vmem [shape: bf16[128,128], index: 3, kind: input, shape index: {}]   ;;  %s583_s2 = inlined_call_operand.vmem [shape: f32[1,128], index: 2, kind: input, shape index: {}]   ;;  %s584_s4 = inlined_call_operand.vmem [shape: f32[1,128], index: 4, kind: input, shape index: {}]   ;;  %s585_s5 = inlined_call_operand.vmem [shape: bf16[32,128], index: 5, kind: output, shape index: {}]  }
   0x1   :  { %v446_v0 = vld [vmem:[%s580_s1 + $0x38] sm:$0xff]   ;;  %v447_v1 = vld [vmem:[%s580_s1 + $0x30] sm:$0xff]   ;;  %v448_v2 = vld [vmem:[%s580_s1 + $0x28] sm:$0xff]  }
   0x2   :  { %406 = vmatprep.subr.bf16.mxu0 %v446_v0  ;;  %v449_v3 = vld [vmem:[%s580_s1 + $0x20] sm:$0xff]   ;;  %v450_v5 = vld [vmem:[%s580_s1 + $0x18] sm:$0xff]   ;;  %v451_v6 = vld [vmem:[%s580_s1 + $0x10] sm:$0xff]  }
   0x3   :  { %407 = vmatpush3.bf16.msra.mxu0 %v446_v0  ;;  %v519_v4 = vld [vmem:[%s581_s0] sm:$0xff]   ;;  %v452_v7 = vld [vmem:[%s580_s1 + $0x8] sm:$0xff]   ;;  %v456_v10 = vld [vmem:[%s582_s3 + $0x38] sm:$0xff]  }
   0x4   :  { %408 = vmatprep.subr.bf16.mxu0 %v447_v1  ;;  %422 = vmatprep.mubr.bf16.mxu0 %v519_v4  ;;  %v453_v8 = vld [vmem:[%s580_s1] sm:$0xff]   ;;  %v537_v9 = vld [vmem:[%s581_s0 + $0x8] sm:$0xff]   ;;  %v457_v11 = vld [vmem:[%s582_s3 + $0x30] sm:$0xff]  }
   0x5   :  { %426 = vmatprep.subr.bf16.mxu1 %v456_v10  ;;  %v458_v12 = vld [vmem:[%s582_s3 + $0x28] sm:$0xff]   ;;  %v459_v13 = vld [vmem:[%s582_s3 + $0x20] sm:$0xff]   ;;  %v460_v14 = vld [vmem:[%s582_s3 + $0x18] sm:$0xff]  }
   0x6   :  { %427 = vmatpush3.bf16.msra.mxu1 %v456_v10  ;;  %v461_v15 = vld [vmem:[%s582_s3 + $0x10] sm:$0xff]   ;;  %v462_v16 = vld [vmem:[%s582_s3 + $0x8] sm:$0xff]   ;;  %v463_v17 = vld [vmem:[%s582_s3] sm:$0xff]   ;;  %v315_v10 = vunpack.c.l.bf16 %v519_v4 }
   0x7   :  { %409 = vmatpush3.bf16.msra.mxu0 %v447_v1  ;;  %428 = vmatprep.subr.bf16.mxu1 %v457_v11  ;;  %v347_v18 = vld [vmem:[%s583_s2] ss:$0 sm:$0xff] }
   0x8   :  { %410 = vmatprep.subr.bf16.mxu0 %v448_v2 }
   0xa   :  { %429 = vmatpush3.bf16.msra.mxu1 %v457_v11  ;;  %v316_v11 = vunpack.c.h.bf16 %v519_v4 }
   0xb   :  { %411 = vmatpush3.bf16.msra.mxu0 %v448_v2  ;;  %430 = vmatprep.subr.bf16.mxu1 %v458_v12  ;;  %v358_v2 = vld [vmem:[%s584_s4] ss:$0 sm:$0xff] }
   0xc   :  { %412 = vmatprep.subr.bf16.mxu0 %v449_v3 }
   0xe   :  { %431 = vmatpush3.bf16.msra.mxu1 %v458_v12 }
   0xf   :  { %413 = vmatpush3.bf16.msra.mxu0 %v449_v3  ;;  %432 = vmatprep.subr.bf16.mxu1 %v459_v13 }
  0x10   :  { %414 = vmatprep.subr.bf16.mxu0 %v450_v5 }
  0x12   :  { %433 = vmatpush3.bf16.msra.mxu1 %v459_v13 }
  0x13   :  { %415 = vmatpush3.bf16.msra.mxu0 %v450_v5  ;;  %434 = vmatprep.subr.bf16.mxu1 %v460_v14 }
  0x14   :  { %416 = vmatprep.subr.bf16.mxu0 %v451_v6 }
  0x16   :  { %435 = vmatpush3.bf16.msra.mxu1 %v460_v14 }
  0x17   :  { %417 = vmatpush3.bf16.msra.mxu0 %v451_v6  ;;  %436 = vmatprep.subr.bf16.mxu1 %v461_v15  ;;  %v317_v6 = vunpack.c.l.bf16 %v537_v9 }
  0x18   :  { %418 = vmatprep.subr.bf16.mxu0 %v452_v7 }
  0x1a   :  { %437 = vmatpush3.bf16.msra.mxu1 %v461_v15 }
  0x1b   :  { %419 = vmatpush3.bf16.msra.mxu0 %v452_v7  ;;  %438 = vmatprep.subr.bf16.mxu1 %v462_v16  ;;  %v318_v7 = vunpack.c.h.bf16 %v537_v9 }
  0x1c   :  { %420 = vmatprep.subr.bf16.mxu0 %v453_v8 }
  0x1e   :  { %439 = vmatpush3.bf16.msra.mxu1 %v462_v16 }
  0x1f   :  { %421 = vmatpush3.bf16.msra.mxu0 %v453_v8  ;;  %440 = vmatprep.subr.bf16.mxu1 %v463_v17 }
  0x22   :  { %423 = vmatmul.mubr.bf16.vlgmr.msra.gmra.mxu0 %v537_v9  ;;  %441 = vmatpush3.bf16.msra.mxu1 %v463_v17 }
  0xe2   :  { %v424_v19 = vpop.f32.mrf.mxu0 }
  0xe3   :  { %v151_v20 = vadd.f32 %v424_v19, %v347_v18 }
  0xe4   :  { %v142_v21 = vpop.f32.mrf.mxu0 }
  0xe5   :  { %v159_v22 = vmul.f32 %v151_v20, %v151_v20  ;;  %v143_v23 = vadd.f32 %v347_v18, %v142_v21 }
  0xe6   :  { %v425_v24 = vpop.f32.mrf.mxu0 }
  0xe7   :  { %v163_v25 = vmul.f32 %v159_v22, %v151_v20  ;;  %v157_v26 = vmul.f32 %v143_v23, %v143_v23  ;;  %v154_v27 = vadd.f32 %v425_v24, %v347_v18 }
  0xe8   :  { %v145_v28 = vpop.f32.mrf.mxu0 }
  0xe9   :  { %v167_v29 = vmul.f32 0.044715, %v163_v25  ;;  %v161_v30 = vmul.f32 %v157_v26, %v143_v23  ;;  %v160_v31 = vmul.f32 %v154_v27, %v154_v27  ;;  %v146_v32 = vadd.f32 %v347_v18, %v145_v28 }
  0xeb   :  { %v171_v33 = vadd.f32 %v167_v29, %v151_v20  ;;  %v165_v34 = vmul.f32 0.044715, %v161_v30  ;;  %v164_v35 = vmul.f32 %v160_v31, %v154_v27  ;;  %v158_v36 = vmul.f32 %v146_v32, %v146_v32 }
  0xed   :  { %v175_v37 = vmul.f32 0.7978846, %v171_v33  ;;  %v169_v38 = vadd.f32 %v165_v34, %v143_v23  ;;  %v168_v39 = vmul.f32 0.044715, %v164_v35  ;;  %v162_v40 = vmul.f32 %v158_v36, %v146_v32 }
  0xef   :  { %v172_v41 = vadd.f32 %v168_v39, %v154_v27  ;;  %v166_v42 = vmul.f32 0.044715, %v162_v40  ;;  %v173_v43 = vmul.f32 0.7978846, %v169_v38  ;;  %466 = vtanh.f32 %v175_v37 }
  0xf1   :  { %v176_v44 = vmul.f32 0.7978846, %v172_v41  ;;  %v170_v45 = vadd.f32 %v166_v42, %v146_v32  ;;  %468 = vtanh.f32 %v173_v43 }
  0xf3   :  { %470 = vtanh.f32 %v176_v44  ;;  %v174_v46 = vmul.f32 0.7978846, %v170_v45 }
  0xf5   :  { %472 = vtanh.f32 %v174_v46 }
  0xfc   :  { %v467_v47 = vpop.eup %466 }
  0xfd   :  { %v183_v51 = vadd.f32 1.0, %v467_v47 }
  0xfe   :  { %v469_v48 = vpop.eup %468 }
  0xff   :  { %v181_v49 = vadd.f32 1.0, %v469_v48  ;;  %v187_v57 = vmul.f32 0.5, %v183_v51 }
 0x100   :  { %v471_v50 = vpop.eup %470 }
 0x101   :  { %v184_v52 = vadd.f32 1.0, %v471_v50  ;;  %v185_v55 = vmul.f32 0.5, %v181_v49  ;;  %v191_v62 = vmul.f32 %v187_v57, %v151_v20 }
 0x102   :  { %v473_v53 = vpop.eup %472 }
 0x103   :  { %v182_v54 = vadd.f32 1.0, %v473_v53  ;;  %v188_v56 = vmul.f32 0.5, %v184_v52  ;;  %v189_v60 = vmul.f32 %v185_v55, %v143_v23 }
 0x105   :  { %v186_v58 = vmul.f32 0.5, %v182_v54  ;;  %v192_v59 = vmul.f32 %v188_v56, %v154_v27 }
 0x107   :  { %v190_v61 = vmul.f32 %v186_v58, %v146_v32  ;;  %v194_v0 = vpack.c.bf16 %v192_v59, %v191_v62 }
 0x109   :  { %v193_v63 = vpack.c.bf16 %v190_v61, %v189_v60 }
 0x10b   :  { %442 = vmatprep.mubr.bf16.mxu1 %v193_v63 }
 0x10c   :  { %443 = vmatmul.mubr.bf16.vlgmr.msra.gmra.mxu1 %v194_v0 }
 0x1cc   :  { %v444_v1 = vpop.f32.mrf.mxu1 }
 0x1cd   :  { %v309_v5 = vadd.f32 %v444_v1, %v358_v2 }
 0x1ce   :  { %v300_v3 = vpop.f32.mrf.mxu1 }
 0x1cf   :  { %v301_v12 = vadd.f32 %v358_v2, %v300_v3  ;;  %v321_v15 = vadd.f32 %v317_v6, %v309_v5 }
 0x1d0   :  { %v445_v8 = vpop.f32.mrf.mxu1 }
 0x1d1   :  { %v312_v13 = vadd.f32 %v445_v8, %v358_v2  ;;  %v319_v18 = vadd.f32 %v315_v10, %v301_v12 }
 0x1d2   :  { %v303_v14 = vpop.f32.mrf.mxu1 }
 0x1d3   :  { %v322_v16 = vadd.f32 %v318_v7, %v312_v13  ;;  %v304_v17 = vadd.f32 %v358_v2, %v303_v14 }
 0x1d5   :  { %v383_v19 = vpack.c.bf16 %v322_v16, %v321_v15  ;;  %v320_v20 = vadd.f32 %v316_v11, %v304_v17 }
 0x1d7   :  { %385 = vst [vmem:[%s585_s5 + $0x8] sm:$0xff] %v383_v19   ;;  %v378_v21 = vpack.c.bf16 %v320_v20, %v319_v18 }
 0x1d9   :  { %379 = vst [vmem:[%s585_s5] sm:$0xff] %v378_v21  }

// kernel: _forward_core.7
= control target key start
LH: loop header
LB: loop body
LE: loop exit
PB: predicated region body
PF: predicated region fallthrough
CT: control target
= control target key end

     0   :  { %v224_v0 = vmov 0.0   ;;  %vm225_vm0 = vmmov 0   ;;  %vm24_vm1 = vcmask 7168   ;;  %s320_s1 = inlined_call_operand.vmem [shape: bf16[128,128], index: 1, kind: input, shape index: {}]   ;;  %s321_s0 = inlined_call_operand.vmem [shape: bf16[16,128], index: 0, kind: input, shape index: {}]   ;;  %s322_s5 = inlined_call_operand.vmem [shape: f32[16,1], index: 5, kind: output, shape index: {1}]   ;;  %s323_s2 = inlined_call_operand.vmem [shape: f32[1,128], index: 2, kind: input, shape index: {}]   ;;  %s324_s3 = inlined_call_operand.vmem [shape: f32[16,128], index: 3, kind: input, shape index: {}]   ;;  %s325_s4 = inlined_call_operand.vmem [shape: f32[16,128], index: 4, kind: output, shape index: {0}]  }
   0x1   :  { %193 = vmatprep.subr.bf16.mxu0 %v224_v0  ;;  %v215_v1 = vld [vmem:[%s320_s1 + $0x38] sm:$0xff]   ;;  %209 = vmatprep.mubr.msk.bf16.mxu0 %vm225_vm0, %v224_v0  ;;  %v216_v2 = vld [vmem:[%s320_s1 + $0x30] sm:$0xff]   ;;  %v217_v3 = vld [vmem:[%s320_s1 + $0x28] sm:$0xff]   ;;  %25 = vst.msk [vmem:[%s322_s5] sm:$0xff] %vm24_vm1, %v224_v0 }
   0x2   :  { %194 = vmatpush3.bf16.msra.mxu0 %v215_v1  ;;  %v218_v4 = vld [vmem:[%s320_s1 + $0x20] sm:$0xff]   ;;  %v219_v5 = vld [vmem:[%s320_s1 + $0x18] sm:$0xff]   ;;  %v220_v6 = vld [vmem:[%s320_s1 + $0x10] sm:$0xff]   ;;  %26 = vst.msk [vmem:[%s322_s5 + $0x8] sm:$0xff] %vm24_vm1, %v224_v0 }
   0x3   :  { %195 = vmatprep.subr.bf16.mxu0 %v224_v0  ;;  %v221_v7 = vld [vmem:[%s320_s1 + $0x8] sm:$0xff]   ;;  %v222_v8 = vld [vmem:[%s320_s1] sm:$0xff]  }
   0x4   :  { %v223_v9 = vld [vmem:[%s321_s0] sm:$0xff]   ;;  %v150_v17 = vld [vmem:[%s324_s3 + $0x8] sm:$0xff] }
   0x5   :  { %v174_v10 = vld [vmem:[%s323_s2] ss:$0 sm:$0xff] }
   0x6   :  { %196 = vmatpush3.bf16.msra.mxu0 %v216_v2  ;;  %v149_v12 = vld [vmem:[%s324_s3] sm:$0xff] }
   0x7   :  { %197 = vmatprep.subr.bf16.mxu0 %v224_v0 }
   0x8   :  { %v153_v23 = vld [vmem:[%s322_s5] sm:$0xff] }
   0x9   :  { %v154_v26 = vld [vmem:[%s322_s5 + $0x8] sm:$0xff] }
   0xa   :  { %198 = vmatpush3.bf16.msra.mxu0 %v217_v3 }
   0xb   :  { %199 = vmatprep.subr.bf16.mxu0 %v224_v0 }
   0xe   :  { %200 = vmatpush3.bf16.msra.mxu0 %v218_v4 }
   0xf   :  { %201 = vmatprep.subr.bf16.mxu0 %v224_v0 }
  0x12   :  { %202 = vmatpush3.bf16.msra.mxu0 %v219_v5 }
  0x13   :  { %203 = vmatprep.subr.bf16.mxu0 %v224_v0 }
  0x16   :  { %204 = vmatpush3.bf16.msra.mxu0 %v220_v6 }
  0x17   :  { %205 = vmatprep.subr.bf16.mxu0 %v224_v0 }
  0x1a   :  { %206 = vmatpush3.bf16.msra.mxu0 %v221_v7 }
  0x1b   :  { %207 = vmatprep.subr.bf16.mxu0 %v224_v0 }
  0x1e   :  { %208 = vmatpush3.bf16.msra.mxu0 %v222_v8 }
  0x21   :  { %210 = vmatmul.mubr.bf16.vlgmr.msra.gmra.mxu0 %v223_v9 }
  0xe1   :  { %v140_v11 = vpop.f32.mrf.mxu0 }
  0xe2   :  { %v141_v13 = vadd.f32 %v174_v10, %v140_v11 }
  0xe3   :  { %v211_v14 = vpop.f32.mrf.mxu0 }
  0xe4   :  { %147 = vst [vmem:[%s325_s4] sm:$0xff] %v141_v13  ;;  %v151_v15 = vsub.f32 %v141_v13, %v149_v12 }
  0xe5   :  { %v143_v16 = vpop.f32.mrf.mxu0 }
  0xe6   :  { %v144_v18 = vadd.f32 %v174_v10, %v143_v16  ;;  %v155_v19 = vmul.f32 %v151_v15, %v151_v15 }
  0xe7   :  { %v212_v20 = vpop.f32.mrf.mxu0 }
  0xe8   :  { %148 = vst [vmem:[%s325_s4 + $0x8] sm:$0xff] %v144_v18  ;;  %157 = vadd.xlane.f32.xlu0 %v155_v19  ;;  %v152_v21 = vsub.f32 %v144_v18, %v150_v17 }
  0xea   :  { %v156_v22 = vmul.f32 %v152_v21, %v152_v21 }
  0xec   :  { %159 = vadd.xlane.f32.xlu0 %v156_v22 }
 0x171   :  { %v158_v24 = vpop.xlane.xlu0 %157 }
 0x172   :  { %v161_v25 = vadd.f32 %v158_v24, %v153_v23 }
 0x174   :  { %164 = vst.msk [vmem:[%s322_s5] sm:$0xff] %vm24_vm1, %v161_v25 }
 0x175   :  { %v160_v27 = vpop.xlane.xlu0 %159 }
 0x176   :  { %v162_v28 = vadd.f32 %v160_v27, %v154_v26 }
 0x178   :  { %165 = vst.msk [vmem:[%s322_s5 + $0x8] sm:$0xff] %vm24_vm1, %v162_v28 }

// kernel: _forward_core.6
= control target key start
LH: loop header
LB: loop body
LE: loop exit
PB: predicated region body
PF: predicated region fallthrough
CT: control target
= control target key end

     0   :  { %vm22_vm0 = vcmask 7168   ;;  %v448_v10 = vmov -1e+30   ;;  %v449_v20 = vmov 0   ;;  %v450_v21 = vmov 0.0   ;;  %s643_s1 = inlined_call_operand.vmem [shape: bf16[128,128], index: 1, kind: input, shape index: {}]   ;;  %s644_s0 = inlined_call_operand.vmem [shape: bf16[32,128], index: 0, kind: input, shape index: {}]   ;;  %s645_s2 = inlined_call_operand.vmem [shape: f32[1,128], index: 2, kind: input, shape index: {}]   ;;  %s646_s3 = inlined_call_operand.vmem [shape: s32[32,1], index: 3, kind: input, shape index: {}]   ;;  %s647_s4 = inlined_call_operand.vmem [shape: f32[32,1], index: 4, kind: output, shape index: {}]  }
   0x1   :  { %v414_v0 = vld [vmem:[%s643_s1 + $0x38] sm:$0xff]   ;;  %v415_v1 = vld [vmem:[%s643_s1 + $0x30] sm:$0xff]   ;;  %v416_v2 = vld [vmem:[%s643_s1 + $0x28] sm:$0xff]   ;;  %25 = vst.msk [vmem:[#allocation2 + $0x10] sm:$0xff] %vm22_vm0, %v448_v10  ;;  %413 = vset.pattern.permute.xlu1 %v449_v20  ;;  %412 = vset.pattern.permute.xlu0 %v449_v20  ;;  %v175_v57 = vlaneseq }
   0x2   :  { %389 = vmatprep.subr.bf16.mxu0 %v414_v0  ;;  %v417_v3 = vld [vmem:[%s643_s1 + $0x20] sm:$0xff]   ;;  %v418_v5 = vld [vmem:[%s643_s1 + $0x18] sm:$0xff]   ;;  %v419_v6 = vld [vmem:[%s643_s1 + $0x10] sm:$0xff]   ;;  %23 = vst.msk [vmem:[#allocation2] sm:$0xff] %vm22_vm0, %v448_v10 }
   0x3   :  { %390 = vmatpush3.bf16.msra.mxu0 %v414_v0  ;;  %v422_v4 = vld [vmem:[%s644_s0] sm:$0xff]   ;;  %v420_v7 = vld [vmem:[%s643_s1 + $0x8] sm:$0xff]   ;;  %24 = vst.msk [vmem:[#allocation2 + $0x8] sm:$0xff] %vm22_vm0, %v448_v10  ;;  %26 = vst.msk [vmem:[#allocation2 + $0x18] sm:$0xff] %vm22_vm0, %v448_v10  ;;  %v176_v60 = vand.u32 127, %v175_v57 }
   0x4   :  { %391 = vmatprep.subr.bf16.mxu0 %v415_v1  ;;  %405 = vmatprep.mubr.bf16.mxu0 %v422_v4  ;;  %v421_v8 = vld [vmem:[%s643_s1] sm:$0xff]   ;;  %v423_v9 = vld [vmem:[%s644_s0 + $0x8] sm:$0xff]   ;;  %27 = vst.msk [vmem:[#allocation3] sm:$0xff] %vm22_vm0, %v450_v21  ;;  %28 = vst.msk [vmem:[#allocation3 + $0x8] sm:$0xff] %vm22_vm0, %v450_v21 }
   0x5   :  { %v364_v11 = vld [vmem:[%s645_s2] ss:$0 sm:$0xff]  ;;  %29 = vst.msk [vmem:[#allocation3 + $0x10] sm:$0xff] %vm22_vm0, %v450_v21  ;;  %30 = vst.msk [vmem:[#allocation3 + $0x18] sm:$0xff] %vm22_vm0, %v450_v21  ;;  %v585_v39 = vld [vmem:[%s646_s3 + $0x8] sm:$0xff] }
   0x6   :  { %31 = vst.msk [vmem:[#allocation4] sm:$0xff] %vm22_vm0, %v450_v21  ;;  %32 = vst.msk [vmem:[#allocation4 + $0x8] sm:$0xff] %vm22_vm0, %v450_v21  ;;  %v579_v38 = vld [vmem:[%s646_s3] sm:$0xff]  ;;  %v591_v40 = vld [vmem:[%s646_s3 + $0x10] sm:$0xff]  ;;  %vm313_vm6 = vcmp.ne.s32.totalorder %v585_v39, 4294967196 }
   0x7   :  { %392 = vmatpush3.bf16.msra.mxu0 %v415_v1  ;;  %33 = vst.msk [vmem:[#allocation4 + $0x10] sm:$0xff] %vm22_vm0, %v450_v21  ;;  %34 = vst.msk [vmem:[#allocation4 + $0x18] sm:$0xff] %vm22_vm0, %v450_v21  ;;  %v597_v41 = vld [vmem:[%s646_s3 + $0x18] sm:$0xff]  ;;  %vm312_vm5 = vcmp.ne.s32.totalorder %v579_v38, 4294967196  ;;  %vm314_vm8 = vcmp.ne.s32.totalorder %v591_v40, 4294967196 }
   0x8   :  { %393 = vmatprep.subr.bf16.mxu0 %v416_v2  ;;  %v541_v22 = vld [vmem:[#allocation2 + $0x10] sm:$0xff]  ;;  %vm315_vm7 = vcmp.ne.s32.totalorder %v597_v41, 4294967196 }
   0x9   :  { %v543_v24 = vld [vmem:[#allocation2] sm:$0xff] }
   0xa   :  { %v548_v27 = vld [vmem:[#allocation2 + $0x18] sm:$0xff]  ;;  %v558_v31 = vld [vmem:[#allocation2 + $0x8] sm:$0xff] }
   0xb   :  { %394 = vmatpush3.bf16.msra.mxu0 %v416_v2 }
   0xc   :  { %395 = vmatprep.subr.bf16.mxu0 %v417_v3  ;;  %v198_v20 = vld [vmem:[#allocation3 + $0x10] sm:$0xff] }
   0xf   :  { %396 = vmatpush3.bf16.msra.mxu0 %v417_v3 }
  0x10   :  { %397 = vmatprep.subr.bf16.mxu0 %v418_v5 }
  0x13   :  { %398 = vmatpush3.bf16.msra.mxu0 %v418_v5 }
  0x14   :  { %399 = vmatprep.subr.bf16.mxu0 %v419_v6 }
  0x17   :  { %400 = vmatpush3.bf16.msra.mxu0 %v419_v6 }
  0x18   :  { %401 = vmatprep.subr.bf16.mxu0 %v420_v7 }
  0x1b   :  { %402 = vmatpush3.bf16.msra.mxu0 %v420_v7 }
  0x1c   :  { %403 = vmatprep.subr.bf16.mxu0 %v421_v8 }
  0x1f   :  { %404 = vmatpush3.bf16.msra.mxu0 %v421_v8 }
  0x22   :  { %406 = vmatmul.mubr.bf16.vlgmr.msra.gmra.mxu0 %v423_v9  ;;  %v196_v9 = vld [vmem:[#allocation3] sm:$0xff] }
  0xe2   :  { %v407_v12 = vpop.f32.mrf.mxu0 }
  0xe3   :  { %v513_v13 = vadd.f32 %v407_v12, %v364_v11 }
  0xe4   :  { %v156_v14 = vpop.f32.mrf.mxu0 }
  0xe5   :  { %v515_v15 = vadd.f32 %v364_v11, %v156_v14  ;;  %188 = vmax.xlane.f32.xlu1 %v513_v13 }
  0xe6   :  { %v408_v16 = vpop.f32.mrf.mxu0 }
  0xe7   :  { %v518_v17 = vadd.f32 %v408_v16, %v364_v11  ;;  %184 = vmax.xlane.f32.xlu0 %v515_v15 }
  0xe8   :  { %v159_v18 = vpop.f32.mrf.mxu0 }
  0xe9   :  { %v521_v19 = vadd.f32 %v364_v11, %v159_v18  ;;  %190 = vmax.xlane.f32.xlu1 %v518_v17 }
  0xeb   :  { %186 = vmax.xlane.f32.xlu0 %v521_v19 }
 0x16e   :  { %v189_v23 = vpop.xlane.xlu1 %188 }
 0x16f   :  { %v546_v25 = vmax.f32 %v541_v22, %v189_v23 }
 0x170   :  { %v185_v26 = vpop.xlane.xlu0 %184 }
 0x171   :  { %v202_v28 = vsub.f32 %v541_v22, %v546_v25  ;;  %267 = vst.msk [vmem:[#allocation2 + $0x10] sm:$0xff] %vm22_vm0, %v546_v25  ;;  %v555_v29 = vmax.f32 %v543_v24, %v185_v26  ;;  %228 = vperm.xlu1 %413, %v546_v25  }
 0x172   :  { %v191_v30 = vpop.xlane.xlu1 %190 }
 0x173   :  { %v200_v32 = vsub.f32 %v543_v24, %v555_v29  ;;  %265 = vst.msk [vmem:[#allocation2] sm:$0xff] %vm22_vm0, %v555_v29  ;;  %v565_v33 = vmax.f32 %v548_v27, %v191_v30  ;;  %218 = vperm.xlu0 %412, %v555_v29   ;;  %v208_v6 = vmul.f32 1.442695, %v202_v28  ;;  %v270_v30 = vld [vmem:[#allocation4 + $0x8] sm:$0xff] }
 0x174   :  { %v187_v34 = vpop.xlane.xlu0 %186 }
 0x175   :  { %v203_v35 = vsub.f32 %v548_v27, %v565_v33  ;;  %268 = vst.msk [vmem:[#allocation2 + $0x18] sm:$0xff] %vm22_vm0, %v565_v33  ;;  %v193_v36 = vmax.f32 %v558_v31, %v187_v34  ;;  %v204_v4 = vmul.f32 1.442695, %v200_v32 }
 0x177   :  { %v201_v37 = vsub.f32 %v558_v31, %v193_v36  ;;  %266 = vst.msk [vmem:[#allocation2 + $0x8] sm:$0xff] %vm22_vm0, %v193_v36  ;;  %223 = vperm.xlu1 %413, %v193_v36   ;;  %v210_v7 = vmul.f32 1.442695, %v203_v35  ;;  %v269_v31 = vld [vmem:[#allocation4] sm:$0xff] }
 0x179   :  { %v206_v5 = vmul.f32 1.442695, %v201_v37  ;;  %v272_v37 = vld [vmem:[#allocation4 + $0x18] sm:$0xff] }
 0x17b   :  { %233 = vperm.xlu1 %413, %v565_v33  }
 0x17f   :  { %274 = vperm.xlu1 %413, %v579_v38  }
 0x183   :  { %277 = vperm.xlu1 %413, %v585_v39   ;;  %v327_v39 = vld [vmem:[#allocation2 + $0x18] sm:$0xff] }
 0x187   :  { %280 = vperm.xlu1 %413, %v591_v40  }
 0x18b   :  { %283 = vperm.xlu1 %413, %v597_v41   ;;  %v377_v41 = vsel %vm314_vm8, 1.0, %v450_v21 }
 0x1ec   :  { %v229_v42 = vpop.permute.xlu1 %228 }
 0x1ed   :  { %v238_v46 = vsub.f32 %v513_v13, %v229_v42  ;;  %v271_v42 = vld [vmem:[#allocation4 + $0x10] sm:$0xff] }
 0x1ee   :  { %v219_v43 = vpop.permute.xlu0 %218 }
 0x1ef   :  { %v236_v44 = vsub.f32 %v515_v15, %v219_v43  ;;  %v244_v50 = vmul.f32 1.442695, %v238_v46 }
 0x1f1   :  { %v240_v45 = vmul.f32 1.442695, %v236_v44 }
 0x1f2   :  { %v224_v47 = vpop.permute.xlu1 %223 }
 0x1f3   :  { %424 = vpow2.f32 %v240_v45  ;;  %v237_v48 = vsub.f32 %v521_v19, %v224_v47 }
 0x1f5   :  { %v242_v49 = vmul.f32 1.442695, %v237_v48 }
 0x1f6   :  { %v234_v51 = vpop.permute.xlu1 %233 }
 0x1f7   :  { %426 = vpow2.f32 %v242_v49  ;;  %v239_v52 = vsub.f32 %v518_v17, %v234_v51  ;;  %v324_v51 = vld [vmem:[#allocation2] sm:$0xff] }
 0x1f8   :  { %428 = vpow2.f32 %v244_v50 }
 0x1f9   :  { %v246_v53 = vmul.f32 1.442695, %v239_v52 }
 0x1fa   :  { %v275_v54 = vpop.permute.xlu1 %274 }
 0x1fb   :  { %430 = vpow2.f32 %v246_v53  ;;  %vm285_vm1 = vcmp.eq.s32.totalorder %v176_v60, %v275_v54  ;;  %v375_v54 = vsel %vm312_vm5, 1.0, %v450_v21 }
 0x1fc   :  { %v289_v0 = vsel %vm285_vm1, %v515_v15, 0.0  ;;  %432 = vpow2.f32 %v204_v4 }
 0x1fd   :  { %434 = vpow2.f32 %v206_v5 }
 0x1fe   :  { %v278_v55 = vpop.permute.xlu1 %277  ;;  %436 = vpow2.f32 %v208_v6  ;;  %v378_v6 = vsel %vm315_vm7, 1.0, %v450_v21 }
 0x1ff   :  { %vm286_vm2 = vcmp.eq.s32.totalorder %v176_v60, %v278_v55  ;;  %438 = vpow2.f32 %v210_v7 }
 0x200   :  { %v425_v56 = vpop.eup %424  ;;  %v290_v1 = vsel %vm286_vm2, %v521_v19, 0.0  ;;  %v199_v19 = vld [vmem:[#allocation3 + $0x18] sm:$0xff] }
 0x201   :  { %248 = vadd.xlane.f32.xlu1 %v425_v56 }
 0x202   :  { %v281_v59 = vpop.permute.xlu1 %280 }
 0x203   :  { %vm287_vm3 = vcmp.eq.s32.totalorder %v176_v60, %v281_v59 }
 0x204   :  { %v427_v58 = vpop.eup %426  ;;  %v291_v2 = vsel %vm287_vm3, %v513_v13, 0.0  ;;  %v197_v13 = vld [vmem:[#allocation3 + $0x8] sm:$0xff] }
 0x205   :  { %250 = vadd.xlane.f32.xlu0 %v427_v58  ;;  %v429_v61 = vpop.eup %428  ;;  %v325_v58 = vld [vmem:[#allocation2 + $0x8] sm:$0xff] }
 0x206   :  { %v284_v63 = vpop.permute.xlu1 %283 }
 0x207   :  { %vm288_vm4 = vcmp.eq.s32.totalorder %v176_v60, %v284_v63 }
 0x208   :  { %v431_v62 = vpop.eup %430  ;;  %v292_v3 = vsel %vm288_vm4, %v518_v17, 0.0 }
 0x209   :  { %252 = vadd.xlane.f32.xlu0 %v429_v61  ;;  %254 = vadd.xlane.f32.xlu1 %v431_v62  ;;  %v433_v8 = vpop.eup %432  ;;  %v376_v62 = vsel %vm313_vm6, 1.0, %v450_v21 }
 0x20a   :  { %v212_v10 = vmul.f32 %v433_v8, %v196_v9  ;;  %v435_v11 = vpop.eup %434 }
 0x20b   :  { %v437_v15 = vpop.eup %436  ;;  %v213_v16 = vmul.f32 %v435_v11, %v197_v13 }
 0x20c   :  { %v439_v17 = vpop.eup %438  ;;  %v214_v24 = vmul.f32 %v437_v15, %v198_v20 }
 0x20d   :  { %293 = vadd.xlane.f32.xlu0 %v289_v0  ;;  %295 = vadd.xlane.f32.xlu1 %v290_v1  ;;  %v215_v23 = vmul.f32 %v439_v17, %v199_v19 }
 0x211   :  { %297 = vadd.xlane.f32.xlu0 %v291_v2  ;;  %299 = vadd.xlane.f32.xlu1 %v292_v3  ;;  %v326_v3 = vld [vmem:[#allocation2 + $0x10] sm:$0xff] }
 0x28a   :  { %v249_v12 = vpop.xlane.xlu1 %248 }
 0x28b   :  { %v256_v14 = vadd.f32 %v249_v12, %v212_v10 }
 0x28d   :  { %261 = vst.msk [vmem:[#allocation3] sm:$0xff] %vm22_vm0, %v256_v14 }
 0x28e   :  { %v251_v18 = vpop.xlane.xlu0 %250 }
 0x28f   :  { %v257_v22 = vadd.f32 %v251_v18, %v213_v16 }
 0x291   :  { %262 = vst.msk [vmem:[#allocation3 + $0x8] sm:$0xff] %vm22_vm0, %v257_v22 }
 0x292   :  { %v255_v25 = vpop.xlane.xlu1 %254  ;;  %v253_v26 = vpop.xlane.xlu0 %252 }
 0x293   :  { %v259_v27 = vadd.f32 %v255_v25, %v215_v23  ;;  %v258_v28 = vadd.f32 %v253_v26, %v214_v24 }
 0x294   :  { %v328_v29 = vld [vmem:[#allocation3] sm:$0xff] }
 0x295   :  { %440 = vlog2.f32 %v328_v29  ;;  %264 = vst.msk [vmem:[#allocation3 + $0x18] sm:$0xff] %vm22_vm0, %v259_v27  ;;  %263 = vst.msk [vmem:[#allocation3 + $0x10] sm:$0xff] %vm22_vm0, %v258_v28 }
 0x296   :  { %v296_v32 = vpop.xlane.xlu1 %295  ;;  %v294_v33 = vpop.xlane.xlu0 %293 }
 0x297   :  { %v302_v34 = vadd.f32 %v296_v32, %v270_v30  ;;  %v301_v35 = vadd.f32 %v294_v33, %v269_v31 }
 0x298   :  { %v329_v36 = vld [vmem:[#allocation3 + $0x8] sm:$0xff] }
 0x299   :  { %442 = vlog2.f32 %v329_v36  ;;  %306 = vst.msk [vmem:[#allocation4 + $0x8] sm:$0xff] %vm22_vm0, %v302_v34  ;;  %305 = vst.msk [vmem:[#allocation4] sm:$0xff] %vm22_vm0, %v301_v35 }
 0x29a   :  { %v300_v43 = vpop.xlane.xlu1 %299  ;;  %v298_v44 = vpop.xlane.xlu0 %297 }
 0x29b   :  { %v304_v45 = vadd.f32 %v300_v43, %v272_v37  ;;  %v303_v46 = vadd.f32 %v298_v44, %v271_v42 }
 0x29c   :  { %v331_v47 = vld [vmem:[#allocation3 + $0x18] sm:$0xff]  ;;  %v330_v48 = vld [vmem:[#allocation3 + $0x10] sm:$0xff] }
 0x29d   :  { %444 = vlog2.f32 %v331_v47  ;;  %308 = vst.msk [vmem:[#allocation4 + $0x18] sm:$0xff] %vm22_vm0, %v304_v45  ;;  %307 = vst.msk [vmem:[#allocation4 + $0x10] sm:$0xff] %vm22_vm0, %v303_v46 }
 0x29e   :  { %446 = vlog2.f32 %v330_v48 }
 0x2a0   :  { %v344_v55 = vld [vmem:[#allocation4] sm:$0xff]  ;;  %v345_v63 = vld [vmem:[#allocation4 + $0x8] sm:$0xff] }
 0x2a2   :  { %v441_v49 = vpop.eup %440 }
 0x2a3   :  { %v333_v50 = vmul.f32 0.6931472, %v441_v49 }
 0x2a4   :  { %v347_v7 = vld [vmem:[#allocation4 + $0x18] sm:$0xff]  ;;  %v346_v10 = vld [vmem:[#allocation4 + $0x10] sm:$0xff] }
 0x2a5   :  { %v340_v52 = vadd.f32 %v333_v50, %v324_v51 }
 0x2a6   :  { %v443_v53 = vpop.eup %442 }
 0x2a7   :  { %v335_v56 = vmul.f32 0.6931472, %v443_v53  ;;  %v348_v57 = vsub.f32 %v340_v52, %v344_v55 }
 0x2a9   :  { %v341_v59 = vadd.f32 %v335_v56, %v325_v58  ;;  %v352_v60 = vmul.f32 %v375_v54, %v348_v57 }
 0x2aa   :  { %v445_v61 = vpop.eup %444 }
 0x2ab   :  { %v447_v0 = vpop.eup %446  ;;  %v349_v38 = vsub.f32 %v341_v59, %v345_v63  ;;  %356 = vst.msk [vmem:[%s647_s4] sm:$0xff] %vm22_vm0, %v352_v60  ;;  %v339_v1 = vmul.f32 0.6931472, %v445_v61 }
 0x2ac   :  { %v337_v2 = vmul.f32 0.6931472, %v447_v0 }
 0x2ad   :  { %v353_v4 = vmul.f32 %v376_v62, %v349_v38  ;;  %v343_v5 = vadd.f32 %v339_v1, %v327_v39 }
 0x2ae   :  { %v342_v8 = vadd.f32 %v337_v2, %v326_v3 }
 0x2af   :  { %357 = vst.msk [vmem:[%s647_s4 + $0x8] sm:$0xff] %vm22_vm0, %v353_v4  ;;  %v351_v9 = vsub.f32 %v343_v5, %v347_v7 }
 0x2b0   :  { %v350_v11 = vsub.f32 %v342_v8, %v346_v10 }
 0x2b1   :  { %v355_v12 = vmul.f32 %v378_v6, %v351_v9 }
 0x2b2   :  { %v354_v40 = vmul.f32 %v377_v41, %v350_v11 }
 0x2b3   :  { %359 = vst.msk [vmem:[%s647_s4 + $0x18] sm:$0xff] %vm22_vm0, %v355_v12 }
 0x2b4   :  { %358 = vst.msk [vmem:[%s647_s4 + $0x10] sm:$0xff] %vm22_vm0, %v354_v40 }

</bundles_post_ra>
